<compile_context>
chip_gen: v7x
topology: tpu7x:2x2x1
jax: 0.10.0
libtpu: 0.0.40
codegen_flags: <defaults>
</compile_context>

<pallas_src>
import jax
import jax.numpy as jnp
from jax import lax
from jax.experimental import pallas as pl
from jax.experimental.pallas import tpu as pltpu

REPEAT = 3            # GaussianPolicy tiles each of the 5 state slices 3x -> wins = 15
THRESH = 2.0          # `thresh`
DT = 1.0              # IzhikevichNeuron.dt
LOG_SIG_MIN = -20.0
LOG_SIG_MAX = 2.0


# --------------------------------------------------------------------------------------
# Kernel
# --------------------------------------------------------------------------------------
def policy_kernel(state_ref, w_hh_ref, izh_ref, w1_ref, b1_ref, w2_ref, b2_ref,
                  wh_ref, bh_ref, out_ref):
    S, bb, Din = state_ref.shape          # 5 unique timesteps, batch block, num_inputs
    H = w_hh_ref.shape[1]
    A2 = wh_ref.shape[1]                  # 2 * num_actions (mean | log_std fused)
    A = A2 // 2
    wins = S * REPEAT

    # --- packed Izhikevich params: rows = [fc bias, a, b, c, d], kept 2-D (1, H) ---
    bias = izh_ref[0:1, :]
    a = izh_ref[1:2, :]
    b = izh_ref[2:3, :]
    c = izh_ref[3:4, :]
    d = izh_ref[4:5, :]

    # --- fc hoisted out of the recurrence: ONE MXU matmul over the 5 unique timesteps.
    #     state is time-major, so (S, bb, Din) -> (S*bb, Din) keeps rows contiguous and
    #     each timestep's drive is a static, contiguous bb-row slice of the result. ---
    x2d = state_ref[...].reshape(S * bb, Din)
    I2d = jnp.dot(x2d, w_hh_ref[...], preferred_element_type=jnp.float32) + bias
    I_steps = [I2d[s * bb:(s + 1) * bb, :] for s in range(S)]     # static slices

    # --- loop-invariant broadcasts hoisted out of the unrolled 15-step loop
    #     (JAX does not CSE broadcast_in_dim; unrolled loop would emit 15 copies). ---
    shape = (bb, H)
    b_b = jnp.broadcast_to(b, shape)
    c_b = jnp.broadcast_to(c, shape)
    d_b = jnp.broadcast_to(d, shape)
    da_b = jnp.broadcast_to(DT * a, shape)        # dt*a, same mult order as the reference

    # --- Izhikevich recurrence: pure VPU, fully unrolled (wins small & static).
    #     (v, u) live in vregs; only the time-mean of spikes is needed downstream,
    #     so no per-step spike stores.  All math stays f32. ---
    v = jnp.full(shape, -65.0, jnp.float32)       # zeros_state: v = -65
    u = b_b * v                                   #              u = b * v
    spike_sum = jnp.zeros(shape, jnp.float32)
    for t in range(wins):
        I_t = I_steps[t // REPEAT]                # reuse each fc result 3x (time repeat)
        v = v + DT * (0.04 * v * v + 5.0 * v + 140.0 - u + I_t)
        u = u + da_b * (b_b * v - u)
        reset = v >= 30.0
        v = jnp.where(reset, c_b, v)
        u = jnp.where(reset, u + d_b, u)
        spike_sum = spike_sum + (v - THRESH > 0.0).astype(jnp.float32)   # ActFun.forward

    x = spike_sum * (1.0 / wins)                  # torch.mean(spikes, dim=1)

    # --- both ReLU-MLP heads fused into 3 wider matmuls (vs 6 tiny dependent ones):
    #     W1 = [W11 | W21], W2 = blkdiag(W12, W22), Wh = blkdiag(Wm, Wls). ---
    h = jnp.maximum(
        jnp.dot(x, w1_ref[...], preferred_element_type=jnp.float32) + b1_ref[...], 0.0)
    h = jnp.maximum(
        jnp.dot(h, w2_ref[...], preferred_element_type=jnp.float32) + b2_ref[...], 0.0)
    head = jnp.dot(h, wh_ref[...], preferred_element_type=jnp.float32) + bh_ref[...]

    # clamp only the log_std half (columns >= A); single lane-contiguous store
    col = lax.broadcasted_iota(jnp.int32, (bb, A2), 1)
    out_ref[...] = jnp.where(col >= A,
                             jnp.clip(head, LOG_SIG_MIN, LOG_SIG_MAX),
                             head)


# --------------------------------------------------------------------------------------
# One-time parameter packing (model-init time, NOT per forward call)
# --------------------------------------------------------------------------------------
def pack_gaussian_policy_params(p):
    """All Linear weights are stored as (in, out) = torch W^T."""
    f32 = jnp.float32
    H = p["W_hh"].shape[1]
    A = p["Wm"].shape[1]

    def blkdiag(wa, wb):
        za = jnp.zeros_like(wb)
        zb = jnp.zeros_like(wa)
        top = jnp.concatenate([wa, za], axis=1)
        bot = jnp.concatenate([zb, wb], axis=1)
        return jnp.concatenate([top, bot], axis=0)

    packed = {
        "W_hh": p["W_hh"].astype(f32),                                               # (Din,H)
        "izh": jnp.stack([p["bias_hh"], p["a"], p["b"], p["c"], p["d"]]).astype(f32),  # (5,H)
        "W1": jnp.concatenate([p["W11"], p["W21"]], axis=1).astype(f32),             # (H,2H)
        "b1": jnp.concatenate([p["b11"], p["b21"]])[None, :].astype(f32),            # (1,2H)
        "W2": blkdiag(p["W12"], p["W22"]).astype(f32),                               # (2H,2H)
        "b2": jnp.concatenate([p["b12"], p["b22"]])[None, :].astype(f32),            # (1,2H)
        "Wh": blkdiag(p["Wm"], p["Wls"]).astype(f32),                                # (2H,2A)
        "bh": jnp.concatenate([p["bm"], p["bls"]])[None, :].astype(f32),             # (1,2A)
        "num_actions": int(A),
        "hidden_dim": int(H),
    }
    return packed


# --------------------------------------------------------------------------------------
# Forward wrapper
# --------------------------------------------------------------------------------------
def _choose_batch_block(B):
    # Single grid step unless each block carries meaningful work; blocks are a multiple
    # of 8 (f32 sublane) and capped at 64 so the unrolled recurrence state stays in vregs.
    if B < 16:
        return B
    bb = ((B + 1) // 2 + 7) // 8 * 8
    return max(8, min(64, bb, B))


def gaussian_policy_forward(state, packed, *, batch_block=None):
    """state: (B, 5, num_inputs) float32.  `packed` from pack_gaussian_policy_params."""
    state = state.astype(jnp.float32)
    B, S, Din = state.shape
    H = packed["hidden_dim"]
    A = packed["num_actions"]
    A2 = 2 * A
    wins = S * REPEAT

    # Transpose once in the wrapper so the kernel's (S*bb, Din) fc view is contiguous.
    state_t = jnp.transpose(state, (1, 0, 2))                        # (S, B, Din)

    if batch_block is None:
        batch_block = _choose_batch_block(B)
    batch_block = min(batch_block, B)
    num_blocks = pl.cdiv(B, batch_block)
    # NOTE: if B % batch_block != 0 the padded rows of the last block run the recurrence
    # on arbitrary data (results for real rows are unaffected; garbage rows are discarded).

    flops = (2 * B * S * Din * H                                     # fc (unique steps only)
             + wins * B * H * 12                                     # VPU recurrence
             + 2 * B * (H * 2 * H + 2 * H * 2 * H + 2 * H * A2))     # fused MLP heads
    bytes_accessed = int(4 * (state.size + packed["W_hh"].size + packed["izh"].size
                              + packed["W1"].size + packed["b1"].size
                              + packed["W2"].size + packed["b2"].size
                              + packed["Wh"].size + packed["bh"].size + B * A2))

    out = pl.pallas_call(
        policy_kernel,
        out_shape=jax.ShapeDtypeStruct((B, A2), jnp.float32),
        grid_spec=pltpu.PrefetchScalarGridSpec(
            num_scalar_prefetch=0,
            grid=(num_blocks,),
            in_specs=[
                pl.BlockSpec((S, batch_block, Din), lambda i: (0, i, 0)),   # state (time-major)
                pl.BlockSpec((Din, H), lambda i: (0, 0)),                   # fc weight
                pl.BlockSpec((5, H), lambda i: (0, 0)),                     # bias/a/b/c/d
                pl.BlockSpec((H, 2 * H), lambda i: (0, 0)),                 # [W11|W21]
                pl.BlockSpec((1, 2 * H), lambda i: (0, 0)),                 # [b11|b21]
                pl.BlockSpec((2 * H, 2 * H), lambda i: (0, 0)),             # blkdiag(W12,W22)
                pl.BlockSpec((1, 2 * H), lambda i: (0, 0)),                 # [b12|b22]
                pl.BlockSpec((2 * H, A2), lambda i: (0, 0)),                # blkdiag(Wm,Wls)
                pl.BlockSpec((1, A2), lambda i: (0, 0)),                    # [bm|bls]
            ],
            out_specs=pl.BlockSpec((batch_block, A2), lambda i: (i, 0)),    # [mean|log_std]
        ),
        compiler_params=pltpu.CompilerParams(
            dimension_semantics=("parallel",),        # batch blocks are independent
        ),
        cost_estimate=pl.CostEstimate(flops=flops, transcendentals=0,
                                      bytes_accessed=bytes_accessed),
    )(state_t, packed["W_hh"], packed["izh"], packed["W1"], packed["b1"],
      packed["W2"], packed["b2"], packed["Wh"], packed["bh"])

    return out[:, :A], out[:, A:]


# --------------------------------------------------------------------------------------
# Pure-JAX reference (exact PyTorch op order, f32)
# --------------------------------------------------------------------------------------
def _reference(state, p):
    dot = lambda x, w: jnp.dot(x, w, precision=jax.lax.Precision.HIGHEST)
    relu = lambda z: jnp.maximum(z, 0.0)
    B = state.shape[0]
    H = p["W_hh"].shape[1]

    xs = jnp.repeat(state, REPEAT, axis=1)            # [s0,s0,s0,s1,...] like torch.stack
    wins = xs.shape[1]
    v = jnp.full((B, H), -65.0, jnp.float32)
    u = p["b"] * v
    spikes = []
    for t in range(wins):
        I = dot(xs[:, t, :], p["W_hh"]) + p["bias_hh"]
        v = v + DT * (0.04 * v * v + 5.0 * v + 140.0 - u + I)
        u = u + DT * p["a"] * (p["b"] * v - u)
        reset = v >= 30.0
        v = jnp.where(reset, jnp.broadcast_to(p["c"], v.shape), v)
        u = jnp.where(reset, u + p["d"], u)
        spikes.append((v - THRESH > 0.0).astype(jnp.float32))
    x = jnp.mean(jnp.stack(spikes, axis=1), axis=1)

    x1 = relu(dot(x, p["W11"]) + p["b11"])
    x1 = relu(dot(x1, p["W12"]) + p["b12"])
    mean = dot(x1, p["Wm"]) + p["bm"]
    x2 = relu(dot(x, p["W21"]) + p["b21"])
    x2 = relu(dot(x2, p["W22"]) + p["b22"])
    log_std = jnp.clip(dot(x2, p["Wls"]) + p["bls"], LOG_SIG_MIN, LOG_SIG_MAX)
    return mean, log_std


if __name__ == "__main__":
    batch, num_inputs, hidden_dim, num_actions = 2, 24, 32, 8

    key = jax.random.PRNGKey(0)
    keys = jax.random.split(key, 8)

    # weights_init_: xavier_uniform_(W, gain=1), bias = 0.  Weights stored as (in, out).
    def xavier(k, fan_in, fan_out):
        bound = (6.0 / (fan_in + fan_out)) ** 0.5
        return jax.random.uniform(k, (fan_in, fan_out), jnp.float32,
                                  minval=-bound, maxval=bound)

    params = {
        "W_hh": xavier(keys[0], num_inputs, hidden_dim),
        "bias_hh": jnp.zeros((hidden_dim,), jnp.float32),
        "a": 0.02 * jnp.ones((hidden_dim,), jnp.float32),
        "b": 0.2 * jnp.ones((hidden_dim,), jnp.float32),
        "c": -65.0 * jnp.ones((hidden_dim,), jnp.float32),
        "d": 8.0 * jnp.ones((hidden_dim,), jnp.float32),
        "W11": xavier(keys[1], hidden_dim, hidden_dim),
        "b11": jnp.zeros((hidden_dim,), jnp.float32),
        "W12": xavier(keys[2], hidden_dim, hidden_dim),
        "b12": jnp.zeros((hidden_dim,), jnp.float32),
        "W21": xavier(keys[3], hidden_dim, hidden_dim),
        "b21": jnp.zeros((hidden_dim,), jnp.float32),
        "W22": xavier(keys[4], hidden_dim, hidden_dim),
        "b22": jnp.zeros((hidden_dim,), jnp.float32),
        "Wm": xavier(keys[5], hidden_dim, num_actions),
        "bm": jnp.zeros((num_actions,), jnp.float32),
        "Wls": xavier(keys[6], hidden_dim, num_actions),
        "bls": jnp.zeros((num_actions,), jnp.float32),
    }

    # Pack ONCE (model-init time), reuse across forward calls.
    packed = pack_gaussian_policy_params(params)
    packed = jax.tree_util.tree_map(
        lambda x: jax.block_until_ready(x) if isinstance(x, jax.Array) else x, packed)

    # state: (batch, 5 time slices, num_inputs); scaled so the spiking layer fires decisively.
    state = jax.random.normal(keys[7], (batch, 5, num_inputs), jnp.float32) * 40.0

    mean, log_std = gaussian_policy_forward(state, packed)
    jax.block_until_ready((mean, log_std))

    ref_mean, ref_log_std = _reference(state, params)
    assert mean.shape == (batch, num_actions)
    assert log_std.shape == (batch, num_actions)
    assert jnp.allclose(mean, ref_mean, atol=1e-4, rtol=1e-4), "mean mismatch"
    assert jnp.allclose(log_std, ref_log_std, atol=1e-4, rtol=1e-4), "log_std mismatch"

    print("KERNEL_OK")
</pallas_src>

<mosaic_0001>
module attributes {stable_mosaic.version = 11 : i64} {
  func.func @policy_kernel(%arg0: i32, %arg1: memref<5x2x24xf32, #tpu.memory_space<vmem>>, %arg2: memref<24x32xf32, #tpu.memory_space<vmem>>, %arg3: memref<5x32xf32, #tpu.memory_space<vmem>>, %arg4: memref<32x64xf32, #tpu.memory_space<vmem>>, %arg5: memref<1x64xf32, #tpu.memory_space<vmem>>, %arg6: memref<64x64xf32, #tpu.memory_space<vmem>>, %arg7: memref<1x64xf32, #tpu.memory_space<vmem>>, %arg8: memref<64x16xf32, #tpu.memory_space<vmem>>, %arg9: memref<1x16xf32, #tpu.memory_space<vmem>>, %arg10: memref<2x16xf32, #tpu.memory_space<vmem>>) attributes {dimension_semantics = [#tpu.dimension_semantics<parallel>], iteration_bounds = array<i64: 1>, scalar_prefetch = 0 : i64, scratch_operands = 0 : i64, tpu.core_type = #tpu.core_type<tc>, window_params = [{transform_indices = @transform_0, window_bounds = array<i64: 5, 2, 24>}, {pipeline_mode = #tpu.pipeline_mode<synchronous>, transform_indices = @transform_1, window_bounds = array<i64: 24, 32>}, {pipeline_mode = #tpu.pipeline_mode<synchronous>, transform_indices = @transform_2, window_bounds = array<i64: 5, 32>}, {pipeline_mode = #tpu.pipeline_mode<synchronous>, transform_indices = @transform_3, window_bounds = array<i64: 32, 64>}, {pipeline_mode = #tpu.pipeline_mode<synchronous>, transform_indices = @transform_4, window_bounds = array<i64: 1, 64>}, {pipeline_mode = #tpu.pipeline_mode<synchronous>, transform_indices = @transform_5, window_bounds = array<i64: 64, 64>}, {pipeline_mode = #tpu.pipeline_mode<synchronous>, transform_indices = @transform_6, window_bounds = array<i64: 1, 64>}, {pipeline_mode = #tpu.pipeline_mode<synchronous>, transform_indices = @transform_7, window_bounds = array<i64: 64, 16>}, {pipeline_mode = #tpu.pipeline_mode<synchronous>, transform_indices = @transform_8, window_bounds = array<i64: 1, 16>}, {transform_indices = @transform_9, window_bounds = array<i64: 2, 16>}]} {
    %c0 = arith.constant 0 : index
    %c0_0 = arith.constant 0 : index
    %0 = vector.load %arg3[%c0, %c0_0] : memref<5x32xf32, #tpu.memory_space<vmem>>, vector<1x32xf32>
    %c1 = arith.constant 1 : index
    %c0_1 = arith.constant 0 : index
    %1 = vector.load %arg3[%c1, %c0_1] : memref<5x32xf32, #tpu.memory_space<vmem>>, vector<1x32xf32>
    %c2 = arith.constant 2 : index
    %c0_2 = arith.constant 0 : index
    %2 = vector.load %arg3[%c2, %c0_2] : memref<5x32xf32, #tpu.memory_space<vmem>>, vector<1x32xf32>
    %c3 = arith.constant 3 : index
    %c0_3 = arith.constant 0 : index
    %3 = vector.load %arg3[%c3, %c0_3] : memref<5x32xf32, #tpu.memory_space<vmem>>, vector<1x32xf32>
    %c4 = arith.constant 4 : index
    %c0_4 = arith.constant 0 : index
    %4 = vector.load %arg3[%c4, %c0_4] : memref<5x32xf32, #tpu.memory_space<vmem>>, vector<1x32xf32>
    %c0_5 = arith.constant 0 : index
    %c0_6 = arith.constant 0 : index
    %c0_7 = arith.constant 0 : index
    %5 = vector.load %arg1[%c0_5, %c0_6, %c0_7] : memref<5x2x24xf32, #tpu.memory_space<vmem>>, vector<5x2x24xf32>
    %6 = vector.shape_cast %5 : vector<5x2x24xf32> to vector<10x24xf32>
    %c0_8 = arith.constant 0 : index
    %c0_9 = arith.constant 0 : index
    %7 = vector.load %arg2[%c0_8, %c0_9] : memref<24x32xf32, #tpu.memory_space<vmem>>, vector<24x32xf32>
    %cst = arith.constant dense<0.000000e+00> : vector<10x32xf32>
    %8 = tpu.matmul %6, %7, %cst {dimension_numbers = #tpu.dot_dimension_numbers<[1], [0], [0], [1], [0, 0, 1, 1], [], []>} : vector<10x24xf32>, vector<24x32xf32>, vector<10x32xf32> -> vector<10x32xf32>
    %9 = vector.broadcast %0 : vector<1x32xf32> to vector<10x32xf32>
    %10 = arith.addf %8, %9 : vector<10x32xf32>
    %11 = vector.extract_strided_slice %10 {offsets = [0, 0], sizes = [2, 32], strides = [1, 1]} : vector<10x32xf32> to vector<2x32xf32>
    %12 = vector.extract_strided_slice %10 {offsets = [2, 0], sizes = [2, 32], strides = [1, 1]} : vector<10x32xf32> to vector<2x32xf32>
    %13 = vector.extract_strided_slice %10 {offsets = [4, 0], sizes = [2, 32], strides = [1, 1]} : vector<10x32xf32> to vector<2x32xf32>
    %14 = vector.extract_strided_slice %10 {offsets = [6, 0], sizes = [2, 32], strides = [1, 1]} : vector<10x32xf32> to vector<2x32xf32>
    %15 = vector.extract_strided_slice %10 {offsets = [8, 0], sizes = [2, 32], strides = [1, 1]} : vector<10x32xf32> to vector<2x32xf32>
    %16 = vector.shape_cast %2 : vector<1x32xf32> to vector<1x32xf32>
    %17 = vector.broadcast %16 : vector<1x32xf32> to vector<2x32xf32>
    %18 = vector.shape_cast %3 : vector<1x32xf32> to vector<1x32xf32>
    %19 = vector.broadcast %18 : vector<1x32xf32> to vector<2x32xf32>
    %20 = vector.shape_cast %4 : vector<1x32xf32> to vector<1x32xf32>
    %21 = vector.broadcast %20 : vector<1x32xf32> to vector<2x32xf32>
    %cst_10 = arith.constant 1.000000e+00 : f32
    %22 = vector.broadcast %cst_10 : f32 to vector<1x32xf32>
    %23 = arith.mulf %22, %1 : vector<1x32xf32>
    %24 = vector.shape_cast %23 : vector<1x32xf32> to vector<1x32xf32>
    %25 = vector.broadcast %24 : vector<1x32xf32> to vector<2x32xf32>
    %cst_11 = arith.constant -6.500000e+01 : f32
    %26 = vector.broadcast %cst_11 : f32 to vector<2x32xf32>
    %27 = arith.mulf %17, %26 : vector<2x32xf32>
    %cst_12 = arith.constant 0.000000e+00 : f32
    %28 = vector.broadcast %cst_12 : f32 to vector<2x32xf32>
    %cst_13 = arith.constant 4.000000e-02 : f32
    %29 = vector.broadcast %cst_13 : f32 to vector<2x32xf32>
    %30 = arith.mulf %29, %26 : vector<2x32xf32>
    %31 = arith.mulf %30, %26 : vector<2x32xf32>
    %cst_14 = arith.constant 5.000000e+00 : f32
    %32 = vector.broadcast %cst_14 : f32 to vector<2x32xf32>
    %33 = arith.mulf %32, %26 : vector<2x32xf32>
    %34 = arith.addf %31, %33 : vector<2x32xf32>
    %cst_15 = arith.constant 1.400000e+02 : f32
    %35 = vector.broadcast %cst_15 : f32 to vector<2x32xf32>
    %36 = arith.addf %34, %35 : vector<2x32xf32>
    %37 = arith.subf %36, %27 : vector<2x32xf32>
    %38 = arith.addf %37, %11 : vector<2x32xf32>
    %cst_16 = arith.constant 1.000000e+00 : f32
    %39 = vector.broadcast %cst_16 : f32 to vector<2x32xf32>
    %40 = arith.mulf %39, %38 : vector<2x32xf32>
    %41 = arith.addf %26, %40 : vector<2x32xf32>
    %42 = arith.mulf %17, %41 : vector<2x32xf32>
    %43 = arith.subf %42, %27 : vector<2x32xf32>
    %44 = arith.mulf %25, %43 : vector<2x32xf32>
    %45 = arith.addf %27, %44 : vector<2x32xf32>
    %cst_17 = arith.constant 3.000000e+01 : f32
    %46 = vector.broadcast %cst_17 : f32 to vector<2x32xf32>
    %47 = arith.cmpf oge, %41, %46 : vector<2x32xf32>
    %48 = arith.select %47, %19, %41 : vector<2x32xi1>, vector<2x32xf32>
    %49 = arith.addf %45, %21 : vector<2x32xf32>
    %50 = arith.select %47, %49, %45 : vector<2x32xi1>, vector<2x32xf32>
    %cst_18 = arith.constant 2.000000e+00 : f32
    %51 = vector.broadcast %cst_18 : f32 to vector<2x32xf32>
    %52 = arith.subf %48, %51 : vector<2x32xf32>
    %cst_19 = arith.constant 0.000000e+00 : f32
    %53 = vector.broadcast %cst_19 : f32 to vector<2x32xf32>
    %54 = arith.cmpf ogt, %52, %53 : vector<2x32xf32>
    %55 = arith.extui %54 : vector<2x32xi1> to vector<2x32xi32>
    %56 = arith.sitofp %55 : vector<2x32xi32> to vector<2x32xf32>
    %57 = arith.addf %28, %56 : vector<2x32xf32>
    %cst_20 = arith.constant 4.000000e-02 : f32
    %58 = vector.broadcast %cst_20 : f32 to vector<2x32xf32>
    %59 = arith.mulf %58, %48 : vector<2x32xf32>
    %60 = arith.mulf %59, %48 : vector<2x32xf32>
    %cst_21 = arith.constant 5.000000e+00 : f32
    %61 = vector.broadcast %cst_21 : f32 to vector<2x32xf32>
    %62 = arith.mulf %61, %48 : vector<2x32xf32>
    %63 = arith.addf %60, %62 : vector<2x32xf32>
    %cst_22 = arith.constant 1.400000e+02 : f32
    %64 = vector.broadcast %cst_22 : f32 to vector<2x32xf32>
    %65 = arith.addf %63, %64 : vector<2x32xf32>
    %66 = arith.subf %65, %50 : vector<2x32xf32>
    %67 = arith.addf %66, %11 : vector<2x32xf32>
    %cst_23 = arith.constant 1.000000e+00 : f32
    %68 = vector.broadcast %cst_23 : f32 to vector<2x32xf32>
    %69 = arith.mulf %68, %67 : vector<2x32xf32>
    %70 = arith.addf %48, %69 : vector<2x32xf32>
    %71 = arith.mulf %17, %70 : vector<2x32xf32>
    %72 = arith.subf %71, %50 : vector<2x32xf32>
    %73 = arith.mulf %25, %72 : vector<2x32xf32>
    %74 = arith.addf %50, %73 : vector<2x32xf32>
    %cst_24 = arith.constant 3.000000e+01 : f32
    %75 = vector.broadcast %cst_24 : f32 to vector<2x32xf32>
    %76 = arith.cmpf oge, %70, %75 : vector<2x32xf32>
    %77 = arith.select %76, %19, %70 : vector<2x32xi1>, vector<2x32xf32>
    %78 = arith.addf %74, %21 : vector<2x32xf32>
    %79 = arith.select %76, %78, %74 : vector<2x32xi1>, vector<2x32xf32>
    %cst_25 = arith.constant 2.000000e+00 : f32
    %80 = vector.broadcast %cst_25 : f32 to vector<2x32xf32>
    %81 = arith.subf %77, %80 : vector<2x32xf32>
    %cst_26 = arith.constant 0.000000e+00 : f32
    %82 = vector.broadcast %cst_26 : f32 to vector<2x32xf32>
    %83 = arith.cmpf ogt, %81, %82 : vector<2x32xf32>
    %84 = arith.extui %83 : vector<2x32xi1> to vector<2x32xi32>
    %85 = arith.sitofp %84 : vector<2x32xi32> to vector<2x32xf32>
    %86 = arith.addf %57, %85 : vector<2x32xf32>
    %cst_27 = arith.constant 4.000000e-02 : f32
    %87 = vector.broadcast %cst_27 : f32 to vector<2x32xf32>
    %88 = arith.mulf %87, %77 : vector<2x32xf32>
    %89 = arith.mulf %88, %77 : vector<2x32xf32>
    %cst_28 = arith.constant 5.000000e+00 : f32
    %90 = vector.broadcast %cst_28 : f32 to vector<2x32xf32>
    %91 = arith.mulf %90, %77 : vector<2x32xf32>
    %92 = arith.addf %89, %91 : vector<2x32xf32>
    %cst_29 = arith.constant 1.400000e+02 : f32
    %93 = vector.broadcast %cst_29 : f32 to vector<2x32xf32>
    %94 = arith.addf %92, %93 : vector<2x32xf32>
    %95 = arith.subf %94, %79 : vector<2x32xf32>
    %96 = arith.addf %95, %11 : vector<2x32xf32>
    %cst_30 = arith.constant 1.000000e+00 : f32
    %97 = vector.broadcast %cst_30 : f32 to vector<2x32xf32>
    %98 = arith.mulf %97, %96 : vector<2x32xf32>
    %99 = arith.addf %77, %98 : vector<2x32xf32>
    %100 = arith.mulf %17, %99 : vector<2x32xf32>
    %101 = arith.subf %100, %79 : vector<2x32xf32>
    %102 = arith.mulf %25, %101 : vector<2x32xf32>
    %103 = arith.addf %79, %102 : vector<2x32xf32>
    %cst_31 = arith.constant 3.000000e+01 : f32
    %104 = vector.broadcast %cst_31 : f32 to vector<2x32xf32>
    %105 = arith.cmpf oge, %99, %104 : vector<2x32xf32>
    %106 = arith.select %105, %19, %99 : vector<2x32xi1>, vector<2x32xf32>
    %107 = arith.addf %103, %21 : vector<2x32xf32>
    %108 = arith.select %105, %107, %103 : vector<2x32xi1>, vector<2x32xf32>
    %cst_32 = arith.constant 2.000000e+00 : f32
    %109 = vector.broadcast %cst_32 : f32 to vector<2x32xf32>
    %110 = arith.subf %106, %109 : vector<2x32xf32>
    %cst_33 = arith.constant 0.000000e+00 : f32
    %111 = vector.broadcast %cst_33 : f32 to vector<2x32xf32>
    %112 = arith.cmpf ogt, %110, %111 : vector<2x32xf32>
    %113 = arith.extui %112 : vector<2x32xi1> to vector<2x32xi32>
    %114 = arith.sitofp %113 : vector<2x32xi32> to vector<2x32xf32>
    %115 = arith.addf %86, %114 : vector<2x32xf32>
    %cst_34 = arith.constant 4.000000e-02 : f32
    %116 = vector.broadcast %cst_34 : f32 to vector<2x32xf32>
    %117 = arith.mulf %116, %106 : vector<2x32xf32>
    %118 = arith.mulf %117, %106 : vector<2x32xf32>
    %cst_35 = arith.constant 5.000000e+00 : f32
    %119 = vector.broadcast %cst_35 : f32 to vector<2x32xf32>
    %120 = arith.mulf %119, %106 : vector<2x32xf32>
    %121 = arith.addf %118, %120 : vector<2x32xf32>
    %cst_36 = arith.constant 1.400000e+02 : f32
    %122 = vector.broadcast %cst_36 : f32 to vector<2x32xf32>
    %123 = arith.addf %121, %122 : vector<2x32xf32>
    %124 = arith.subf %123, %108 : vector<2x32xf32>
    %125 = arith.addf %124, %12 : vector<2x32xf32>
    %cst_37 = arith.constant 1.000000e+00 : f32
    %126 = vector.broadcast %cst_37 : f32 to vector<2x32xf32>
    %127 = arith.mulf %126, %125 : vector<2x32xf32>
    %128 = arith.addf %106, %127 : vector<2x32xf32>
    %129 = arith.mulf %17, %128 : vector<2x32xf32>
    %130 = arith.subf %129, %108 : vector<2x32xf32>
    %131 = arith.mulf %25, %130 : vector<2x32xf32>
    %132 = arith.addf %108, %131 : vector<2x32xf32>
    %cst_38 = arith.constant 3.000000e+01 : f32
    %133 = vector.broadcast %cst_38 : f32 to vector<2x32xf32>
    %134 = arith.cmpf oge, %128, %133 : vector<2x32xf32>
    %135 = arith.select %134, %19, %128 : vector<2x32xi1>, vector<2x32xf32>
    %136 = arith.addf %132, %21 : vector<2x32xf32>
    %137 = arith.select %134, %136, %132 : vector<2x32xi1>, vector<2x32xf32>
    %cst_39 = arith.constant 2.000000e+00 : f32
    %138 = vector.broadcast %cst_39 : f32 to vector<2x32xf32>
    %139 = arith.subf %135, %138 : vector<2x32xf32>
    %cst_40 = arith.constant 0.000000e+00 : f32
    %140 = vector.broadcast %cst_40 : f32 to vector<2x32xf32>
    %141 = arith.cmpf ogt, %139, %140 : vector<2x32xf32>
    %142 = arith.extui %141 : vector<2x32xi1> to vector<2x32xi32>
    %143 = arith.sitofp %142 : vector<2x32xi32> to vector<2x32xf32>
    %144 = arith.addf %115, %143 : vector<2x32xf32>
    %cst_41 = arith.constant 4.000000e-02 : f32
    %145 = vector.broadcast %cst_41 : f32 to vector<2x32xf32>
    %146 = arith.mulf %145, %135 : vector<2x32xf32>
    %147 = arith.mulf %146, %135 : vector<2x32xf32>
    %cst_42 = arith.constant 5.000000e+00 : f32
    %148 = vector.broadcast %cst_42 : f32 to vector<2x32xf32>
    %149 = arith.mulf %148, %135 : vector<2x32xf32>
    %150 = arith.addf %147, %149 : vector<2x32xf32>
    %cst_43 = arith.constant 1.400000e+02 : f32
    %151 = vector.broadcast %cst_43 : f32 to vector<2x32xf32>
    %152 = arith.addf %150, %151 : vector<2x32xf32>
    %153 = arith.subf %152, %137 : vector<2x32xf32>
    %154 = arith.addf %153, %12 : vector<2x32xf32>
    %cst_44 = arith.constant 1.000000e+00 : f32
    %155 = vector.broadcast %cst_44 : f32 to vector<2x32xf32>
    %156 = arith.mulf %155, %154 : vector<2x32xf32>
    %157 = arith.addf %135, %156 : vector<2x32xf32>
    %158 = arith.mulf %17, %157 : vector<2x32xf32>
    %159 = arith.subf %158, %137 : vector<2x32xf32>
    %160 = arith.mulf %25, %159 : vector<2x32xf32>
    %161 = arith.addf %137, %160 : vector<2x32xf32>
    %cst_45 = arith.constant 3.000000e+01 : f32
    %162 = vector.broadcast %cst_45 : f32 to vector<2x32xf32>
    %163 = arith.cmpf oge, %157, %162 : vector<2x32xf32>
    %164 = arith.select %163, %19, %157 : vector<2x32xi1>, vector<2x32xf32>
    %165 = arith.addf %161, %21 : vector<2x32xf32>
    %166 = arith.select %163, %165, %161 : vector<2x32xi1>, vector<2x32xf32>
    %cst_46 = arith.constant 2.000000e+00 : f32
    %167 = vector.broadcast %cst_46 : f32 to vector<2x32xf32>
    %168 = arith.subf %164, %167 : vector<2x32xf32>
    %cst_47 = arith.constant 0.000000e+00 : f32
    %169 = vector.broadcast %cst_47 : f32 to vector<2x32xf32>
    %170 = arith.cmpf ogt, %168, %169 : vector<2x32xf32>
    %171 = arith.extui %170 : vector<2x32xi1> to vector<2x32xi32>
    %172 = arith.sitofp %171 : vector<2x32xi32> to vector<2x32xf32>
    %173 = arith.addf %144, %172 : vector<2x32xf32>
    %cst_48 = arith.constant 4.000000e-02 : f32
    %174 = vector.broadcast %cst_48 : f32 to vector<2x32xf32>
    %175 = arith.mulf %174, %164 : vector<2x32xf32>
    %176 = arith.mulf %175, %164 : vector<2x32xf32>
    %cst_49 = arith.constant 5.000000e+00 : f32
    %177 = vector.broadcast %cst_49 : f32 to vector<2x32xf32>
    %178 = arith.mulf %177, %164 : vector<2x32xf32>
    %179 = arith.addf %176, %178 : vector<2x32xf32>
    %cst_50 = arith.constant 1.400000e+02 : f32
    %180 = vector.broadcast %cst_50 : f32 to vector<2x32xf32>
    %181 = arith.addf %179, %180 : vector<2x32xf32>
    %182 = arith.subf %181, %166 : vector<2x32xf32>
    %183 = arith.addf %182, %12 : vector<2x32xf32>
    %cst_51 = arith.constant 1.000000e+00 : f32
    %184 = vector.broadcast %cst_51 : f32 to vector<2x32xf32>
    %185 = arith.mulf %184, %183 : vector<2x32xf32>
    %186 = arith.addf %164, %185 : vector<2x32xf32>
    %187 = arith.mulf %17, %186 : vector<2x32xf32>
    %188 = arith.subf %187, %166 : vector<2x32xf32>
    %189 = arith.mulf %25, %188 : vector<2x32xf32>
    %190 = arith.addf %166, %189 : vector<2x32xf32>
    %cst_52 = arith.constant 3.000000e+01 : f32
    %191 = vector.broadcast %cst_52 : f32 to vector<2x32xf32>
    %192 = arith.cmpf oge, %186, %191 : vector<2x32xf32>
    %193 = arith.select %192, %19, %186 : vector<2x32xi1>, vector<2x32xf32>
    %194 = arith.addf %190, %21 : vector<2x32xf32>
    %195 = arith.select %192, %194, %190 : vector<2x32xi1>, vector<2x32xf32>
    %cst_53 = arith.constant 2.000000e+00 : f32
    %196 = vector.broadcast %cst_53 : f32 to vector<2x32xf32>
    %197 = arith.subf %193, %196 : vector<2x32xf32>
    %cst_54 = arith.constant 0.000000e+00 : f32
    %198 = vector.broadcast %cst_54 : f32 to vector<2x32xf32>
    %199 = arith.cmpf ogt, %197, %198 : vector<2x32xf32>
    %200 = arith.extui %199 : vector<2x32xi1> to vector<2x32xi32>
    %201 = arith.sitofp %200 : vector<2x32xi32> to vector<2x32xf32>
    %202 = arith.addf %173, %201 : vector<2x32xf32>
    %cst_55 = arith.constant 4.000000e-02 : f32
    %203 = vector.broadcast %cst_55 : f32 to vector<2x32xf32>
    %204 = arith.mulf %203, %193 : vector<2x32xf32>
    %205 = arith.mulf %204, %193 : vector<2x32xf32>
    %cst_56 = arith.constant 5.000000e+00 : f32
    %206 = vector.broadcast %cst_56 : f32 to vector<2x32xf32>
    %207 = arith.mulf %206, %193 : vector<2x32xf32>
    %208 = arith.addf %205, %207 : vector<2x32xf32>
    %cst_57 = arith.constant 1.400000e+02 : f32
    %209 = vector.broadcast %cst_57 : f32 to vector<2x32xf32>
    %210 = arith.addf %208, %209 : vector<2x32xf32>
    %211 = arith.subf %210, %195 : vector<2x32xf32>
    %212 = arith.addf %211, %13 : vector<2x32xf32>
    %cst_58 = arith.constant 1.000000e+00 : f32
    %213 = vector.broadcast %cst_58 : f32 to vector<2x32xf32>
    %214 = arith.mulf %213, %212 : vector<2x32xf32>
    %215 = arith.addf %193, %214 : vector<2x32xf32>
    %216 = arith.mulf %17, %215 : vector<2x32xf32>
    %217 = arith.subf %216, %195 : vector<2x32xf32>
    %218 = arith.mulf %25, %217 : vector<2x32xf32>
    %219 = arith.addf %195, %218 : vector<2x32xf32>
    %cst_59 = arith.constant 3.000000e+01 : f32
    %220 = vector.broadcast %cst_59 : f32 to vector<2x32xf32>
    %221 = arith.cmpf oge, %215, %220 : vector<2x32xf32>
    %222 = arith.select %221, %19, %215 : vector<2x32xi1>, vector<2x32xf32>
    %223 = arith.addf %219, %21 : vector<2x32xf32>
    %224 = arith.select %221, %223, %219 : vector<2x32xi1>, vector<2x32xf32>
    %cst_60 = arith.constant 2.000000e+00 : f32
    %225 = vector.broadcast %cst_60 : f32 to vector<2x32xf32>
    %226 = arith.subf %222, %225 : vector<2x32xf32>
    %cst_61 = arith.constant 0.000000e+00 : f32
    %227 = vector.broadcast %cst_61 : f32 to vector<2x32xf32>
    %228 = arith.cmpf ogt, %226, %227 : vector<2x32xf32>
    %229 = arith.extui %228 : vector<2x32xi1> to vector<2x32xi32>
    %230 = arith.sitofp %229 : vector<2x32xi32> to vector<2x32xf32>
    %231 = arith.addf %202, %230 : vector<2x32xf32>
    %cst_62 = arith.constant 4.000000e-02 : f32
    %232 = vector.broadcast %cst_62 : f32 to vector<2x32xf32>
    %233 = arith.mulf %232, %222 : vector<2x32xf32>
    %234 = arith.mulf %233, %222 : vector<2x32xf32>
    %cst_63 = arith.constant 5.000000e+00 : f32
    %235 = vector.broadcast %cst_63 : f32 to vector<2x32xf32>
    %236 = arith.mulf %235, %222 : vector<2x32xf32>
    %237 = arith.addf %234, %236 : vector<2x32xf32>
    %cst_64 = arith.constant 1.400000e+02 : f32
    %238 = vector.broadcast %cst_64 : f32 to vector<2x32xf32>
    %239 = arith.addf %237, %238 : vector<2x32xf32>
    %240 = arith.subf %239, %224 : vector<2x32xf32>
    %241 = arith.addf %240, %13 : vector<2x32xf32>
    %cst_65 = arith.constant 1.000000e+00 : f32
    %242 = vector.broadcast %cst_65 : f32 to vector<2x32xf32>
    %243 = arith.mulf %242, %241 : vector<2x32xf32>
    %244 = arith.addf %222, %243 : vector<2x32xf32>
    %245 = arith.mulf %17, %244 : vector<2x32xf32>
    %246 = arith.subf %245, %224 : vector<2x32xf32>
    %247 = arith.mulf %25, %246 : vector<2x32xf32>
    %248 = arith.addf %224, %247 : vector<2x32xf32>
    %cst_66 = arith.constant 3.000000e+01 : f32
    %249 = vector.broadcast %cst_66 : f32 to vector<2x32xf32>
    %250 = arith.cmpf oge, %244, %249 : vector<2x32xf32>
    %251 = arith.select %250, %19, %244 : vector<2x32xi1>, vector<2x32xf32>
    %252 = arith.addf %248, %21 : vector<2x32xf32>
    %253 = arith.select %250, %252, %248 : vector<2x32xi1>, vector<2x32xf32>
    %cst_67 = arith.constant 2.000000e+00 : f32
    %254 = vector.broadcast %cst_67 : f32 to vector<2x32xf32>
    %255 = arith.subf %251, %254 : vector<2x32xf32>
    %cst_68 = arith.constant 0.000000e+00 : f32
    %256 = vector.broadcast %cst_68 : f32 to vector<2x32xf32>
    %257 = arith.cmpf ogt, %255, %256 : vector<2x32xf32>
    %258 = arith.extui %257 : vector<2x32xi1> to vector<2x32xi32>
    %259 = arith.sitofp %258 : vector<2x32xi32> to vector<2x32xf32>
    %260 = arith.addf %231, %259 : vector<2x32xf32>
    %cst_69 = arith.constant 4.000000e-02 : f32
    %261 = vector.broadcast %cst_69 : f32 to vector<2x32xf32>
    %262 = arith.mulf %261, %251 : vector<2x32xf32>
    %263 = arith.mulf %262, %251 : vector<2x32xf32>
    %cst_70 = arith.constant 5.000000e+00 : f32
    %264 = vector.broadcast %cst_70 : f32 to vector<2x32xf32>
    %265 = arith.mulf %264, %251 : vector<2x32xf32>
    %266 = arith.addf %263, %265 : vector<2x32xf32>
    %cst_71 = arith.constant 1.400000e+02 : f32
    %267 = vector.broadcast %cst_71 : f32 to vector<2x32xf32>
    %268 = arith.addf %266, %267 : vector<2x32xf32>
    %269 = arith.subf %268, %253 : vector<2x32xf32>
    %270 = arith.addf %269, %13 : vector<2x32xf32>
    %cst_72 = arith.constant 1.000000e+00 : f32
    %271 = vector.broadcast %cst_72 : f32 to vector<2x32xf32>
    %272 = arith.mulf %271, %270 : vector<2x32xf32>
    %273 = arith.addf %251, %272 : vector<2x32xf32>
    %274 = arith.mulf %17, %273 : vector<2x32xf32>
    %275 = arith.subf %274, %253 : vector<2x32xf32>
    %276 = arith.mulf %25, %275 : vector<2x32xf32>
    %277 = arith.addf %253, %276 : vector<2x32xf32>
    %cst_73 = arith.constant 3.000000e+01 : f32
    %278 = vector.broadcast %cst_73 : f32 to vector<2x32xf32>
    %279 = arith.cmpf oge, %273, %278 : vector<2x32xf32>
    %280 = arith.select %279, %19, %273 : vector<2x32xi1>, vector<2x32xf32>
    %281 = arith.addf %277, %21 : vector<2x32xf32>
    %282 = arith.select %279, %281, %277 : vector<2x32xi1>, vector<2x32xf32>
    %cst_74 = arith.constant 2.000000e+00 : f32
    %283 = vector.broadcast %cst_74 : f32 to vector<2x32xf32>
    %284 = arith.subf %280, %283 : vector<2x32xf32>
    %cst_75 = arith.constant 0.000000e+00 : f32
    %285 = vector.broadcast %cst_75 : f32 to vector<2x32xf32>
    %286 = arith.cmpf ogt, %284, %285 : vector<2x32xf32>
    %287 = arith.extui %286 : vector<2x32xi1> to vector<2x32xi32>
    %288 = arith.sitofp %287 : vector<2x32xi32> to vector<2x32xf32>
    %289 = arith.addf %260, %288 : vector<2x32xf32>
    %cst_76 = arith.constant 4.000000e-02 : f32
    %290 = vector.broadcast %cst_76 : f32 to vector<2x32xf32>
    %291 = arith.mulf %290, %280 : vector<2x32xf32>
    %292 = arith.mulf %291, %280 : vector<2x32xf32>
    %cst_77 = arith.constant 5.000000e+00 : f32
    %293 = vector.broadcast %cst_77 : f32 to vector<2x32xf32>
    %294 = arith.mulf %293, %280 : vector<2x32xf32>
    %295 = arith.addf %292, %294 : vector<2x32xf32>
    %cst_78 = arith.constant 1.400000e+02 : f32
    %296 = vector.broadcast %cst_78 : f32 to vector<2x32xf32>
    %297 = arith.addf %295, %296 : vector<2x32xf32>
    %298 = arith.subf %297, %282 : vector<2x32xf32>
    %299 = arith.addf %298, %14 : vector<2x32xf32>
    %cst_79 = arith.constant 1.000000e+00 : f32
    %300 = vector.broadcast %cst_79 : f32 to vector<2x32xf32>
    %301 = arith.mulf %300, %299 : vector<2x32xf32>
    %302 = arith.addf %280, %301 : vector<2x32xf32>
    %303 = arith.mulf %17, %302 : vector<2x32xf32>
    %304 = arith.subf %303, %282 : vector<2x32xf32>
    %305 = arith.mulf %25, %304 : vector<2x32xf32>
    %306 = arith.addf %282, %305 : vector<2x32xf32>
    %cst_80 = arith.constant 3.000000e+01 : f32
    %307 = vector.broadcast %cst_80 : f32 to vector<2x32xf32>
    %308 = arith.cmpf oge, %302, %307 : vector<2x32xf32>
    %309 = arith.select %308, %19, %302 : vector<2x32xi1>, vector<2x32xf32>
    %310 = arith.addf %306, %21 : vector<2x32xf32>
    %311 = arith.select %308, %310, %306 : vector<2x32xi1>, vector<2x32xf32>
    %cst_81 = arith.constant 2.000000e+00 : f32
    %312 = vector.broadcast %cst_81 : f32 to vector<2x32xf32>
    %313 = arith.subf %309, %312 : vector<2x32xf32>
    %cst_82 = arith.constant 0.000000e+00 : f32
    %314 = vector.broadcast %cst_82 : f32 to vector<2x32xf32>
    %315 = arith.cmpf ogt, %313, %314 : vector<2x32xf32>
    %316 = arith.extui %315 : vector<2x32xi1> to vector<2x32xi32>
    %317 = arith.sitofp %316 : vector<2x32xi32> to vector<2x32xf32>
    %318 = arith.addf %289, %317 : vector<2x32xf32>
    %cst_83 = arith.constant 4.000000e-02 : f32
    %319 = vector.broadcast %cst_83 : f32 to vector<2x32xf32>
    %320 = arith.mulf %319, %309 : vector<2x32xf32>
    %321 = arith.mulf %320, %309 : vector<2x32xf32>
    %cst_84 = arith.constant 5.000000e+00 : f32
    %322 = vector.broadcast %cst_84 : f32 to vector<2x32xf32>
    %323 = arith.mulf %322, %309 : vector<2x32xf32>
    %324 = arith.addf %321, %323 : vector<2x32xf32>
    %cst_85 = arith.constant 1.400000e+02 : f32
    %325 = vector.broadcast %cst_85 : f32 to vector<2x32xf32>
    %326 = arith.addf %324, %325 : vector<2x32xf32>
    %327 = arith.subf %326, %311 : vector<2x32xf32>
    %328 = arith.addf %327, %14 : vector<2x32xf32>
    %cst_86 = arith.constant 1.000000e+00 : f32
    %329 = vector.broadcast %cst_86 : f32 to vector<2x32xf32>
    %330 = arith.mulf %329, %328 : vector<2x32xf32>
    %331 = arith.addf %309, %330 : vector<2x32xf32>
    %332 = arith.mulf %17, %331 : vector<2x32xf32>
    %333 = arith.subf %332, %311 : vector<2x32xf32>
    %334 = arith.mulf %25, %333 : vector<2x32xf32>
    %335 = arith.addf %311, %334 : vector<2x32xf32>
    %cst_87 = arith.constant 3.000000e+01 : f32
    %336 = vector.broadcast %cst_87 : f32 to vector<2x32xf32>
    %337 = arith.cmpf oge, %331, %336 : vector<2x32xf32>
    %338 = arith.select %337, %19, %331 : vector<2x32xi1>, vector<2x32xf32>
    %339 = arith.addf %335, %21 : vector<2x32xf32>
    %340 = arith.select %337, %339, %335 : vector<2x32xi1>, vector<2x32xf32>
    %cst_88 = arith.constant 2.000000e+00 : f32
    %341 = vector.broadcast %cst_88 : f32 to vector<2x32xf32>
    %342 = arith.subf %338, %341 : vector<2x32xf32>
    %cst_89 = arith.constant 0.000000e+00 : f32
    %343 = vector.broadcast %cst_89 : f32 to vector<2x32xf32>
    %344 = arith.cmpf ogt, %342, %343 : vector<2x32xf32>
    %345 = arith.extui %344 : vector<2x32xi1> to vector<2x32xi32>
    %346 = arith.sitofp %345 : vector<2x32xi32> to vector<2x32xf32>
    %347 = arith.addf %318, %346 : vector<2x32xf32>
    %cst_90 = arith.constant 4.000000e-02 : f32
    %348 = vector.broadcast %cst_90 : f32 to vector<2x32xf32>
    %349 = arith.mulf %348, %338 : vector<2x32xf32>
    %350 = arith.mulf %349, %338 : vector<2x32xf32>
    %cst_91 = arith.constant 5.000000e+00 : f32
    %351 = vector.broadcast %cst_91 : f32 to vector<2x32xf32>
    %352 = arith.mulf %351, %338 : vector<2x32xf32>
    %353 = arith.addf %350, %352 : vector<2x32xf32>
    %cst_92 = arith.constant 1.400000e+02 : f32
    %354 = vector.broadcast %cst_92 : f32 to vector<2x32xf32>
    %355 = arith.addf %353, %354 : vector<2x32xf32>
    %356 = arith.subf %355, %340 : vector<2x32xf32>
    %357 = arith.addf %356, %14 : vector<2x32xf32>
    %cst_93 = arith.constant 1.000000e+00 : f32
    %358 = vector.broadcast %cst_93 : f32 to vector<2x32xf32>
    %359 = arith.mulf %358, %357 : vector<2x32xf32>
    %360 = arith.addf %338, %359 : vector<2x32xf32>
    %361 = arith.mulf %17, %360 : vector<2x32xf32>
    %362 = arith.subf %361, %340 : vector<2x32xf32>
    %363 = arith.mulf %25, %362 : vector<2x32xf32>
    %364 = arith.addf %340, %363 : vector<2x32xf32>
    %cst_94 = arith.constant 3.000000e+01 : f32
    %365 = vector.broadcast %cst_94 : f32 to vector<2x32xf32>
    %366 = arith.cmpf oge, %360, %365 : vector<2x32xf32>
    %367 = arith.select %366, %19, %360 : vector<2x32xi1>, vector<2x32xf32>
    %368 = arith.addf %364, %21 : vector<2x32xf32>
    %369 = arith.select %366, %368, %364 : vector<2x32xi1>, vector<2x32xf32>
    %cst_95 = arith.constant 2.000000e+00 : f32
    %370 = vector.broadcast %cst_95 : f32 to vector<2x32xf32>
    %371 = arith.subf %367, %370 : vector<2x32xf32>
    %cst_96 = arith.constant 0.000000e+00 : f32
    %372 = vector.broadcast %cst_96 : f32 to vector<2x32xf32>
    %373 = arith.cmpf ogt, %371, %372 : vector<2x32xf32>
    %374 = arith.extui %373 : vector<2x32xi1> to vector<2x32xi32>
    %375 = arith.sitofp %374 : vector<2x32xi32> to vector<2x32xf32>
    %376 = arith.addf %347, %375 : vector<2x32xf32>
    %cst_97 = arith.constant 4.000000e-02 : f32
    %377 = vector.broadcast %cst_97 : f32 to vector<2x32xf32>
    %378 = arith.mulf %377, %367 : vector<2x32xf32>
    %379 = arith.mulf %378, %367 : vector<2x32xf32>
    %cst_98 = arith.constant 5.000000e+00 : f32
    %380 = vector.broadcast %cst_98 : f32 to vector<2x32xf32>
    %381 = arith.mulf %380, %367 : vector<2x32xf32>
    %382 = arith.addf %379, %381 : vector<2x32xf32>
    %cst_99 = arith.constant 1.400000e+02 : f32
    %383 = vector.broadcast %cst_99 : f32 to vector<2x32xf32>
    %384 = arith.addf %382, %383 : vector<2x32xf32>
    %385 = arith.subf %384, %369 : vector<2x32xf32>
    %386 = arith.addf %385, %15 : vector<2x32xf32>
    %cst_100 = arith.constant 1.000000e+00 : f32
    %387 = vector.broadcast %cst_100 : f32 to vector<2x32xf32>
    %388 = arith.mulf %387, %386 : vector<2x32xf32>
    %389 = arith.addf %367, %388 : vector<2x32xf32>
    %390 = arith.mulf %17, %389 : vector<2x32xf32>
    %391 = arith.subf %390, %369 : vector<2x32xf32>
    %392 = arith.mulf %25, %391 : vector<2x32xf32>
    %393 = arith.addf %369, %392 : vector<2x32xf32>
    %cst_101 = arith.constant 3.000000e+01 : f32
    %394 = vector.broadcast %cst_101 : f32 to vector<2x32xf32>
    %395 = arith.cmpf oge, %389, %394 : vector<2x32xf32>
    %396 = arith.select %395, %19, %389 : vector<2x32xi1>, vector<2x32xf32>
    %397 = arith.addf %393, %21 : vector<2x32xf32>
    %398 = arith.select %395, %397, %393 : vector<2x32xi1>, vector<2x32xf32>
    %cst_102 = arith.constant 2.000000e+00 : f32
    %399 = vector.broadcast %cst_102 : f32 to vector<2x32xf32>
    %400 = arith.subf %396, %399 : vector<2x32xf32>
    %cst_103 = arith.constant 0.000000e+00 : f32
    %401 = vector.broadcast %cst_103 : f32 to vector<2x32xf32>
    %402 = arith.cmpf ogt, %400, %401 : vector<2x32xf32>
    %403 = arith.extui %402 : vector<2x32xi1> to vector<2x32xi32>
    %404 = arith.sitofp %403 : vector<2x32xi32> to vector<2x32xf32>
    %405 = arith.addf %376, %404 : vector<2x32xf32>
    %cst_104 = arith.constant 4.000000e-02 : f32
    %406 = vector.broadcast %cst_104 : f32 to vector<2x32xf32>
    %407 = arith.mulf %406, %396 : vector<2x32xf32>
    %408 = arith.mulf %407, %396 : vector<2x32xf32>
    %cst_105 = arith.constant 5.000000e+00 : f32
    %409 = vector.broadcast %cst_105 : f32 to vector<2x32xf32>
    %410 = arith.mulf %409, %396 : vector<2x32xf32>
    %411 = arith.addf %408, %410 : vector<2x32xf32>
    %cst_106 = arith.constant 1.400000e+02 : f32
    %412 = vector.broadcast %cst_106 : f32 to vector<2x32xf32>
    %413 = arith.addf %411, %412 : vector<2x32xf32>
    %414 = arith.subf %413, %398 : vector<2x32xf32>
    %415 = arith.addf %414, %15 : vector<2x32xf32>
    %cst_107 = arith.constant 1.000000e+00 : f32
    %416 = vector.broadcast %cst_107 : f32 to vector<2x32xf32>
    %417 = arith.mulf %416, %415 : vector<2x32xf32>
    %418 = arith.addf %396, %417 : vector<2x32xf32>
    %419 = arith.mulf %17, %418 : vector<2x32xf32>
    %420 = arith.subf %419, %398 : vector<2x32xf32>
    %421 = arith.mulf %25, %420 : vector<2x32xf32>
    %422 = arith.addf %398, %421 : vector<2x32xf32>
    %cst_108 = arith.constant 3.000000e+01 : f32
    %423 = vector.broadcast %cst_108 : f32 to vector<2x32xf32>
    %424 = arith.cmpf oge, %418, %423 : vector<2x32xf32>
    %425 = arith.select %424, %19, %418 : vector<2x32xi1>, vector<2x32xf32>
    %426 = arith.addf %422, %21 : vector<2x32xf32>
    %427 = arith.select %424, %426, %422 : vector<2x32xi1>, vector<2x32xf32>
    %cst_109 = arith.constant 2.000000e+00 : f32
    %428 = vector.broadcast %cst_109 : f32 to vector<2x32xf32>
    %429 = arith.subf %425, %428 : vector<2x32xf32>
    %cst_110 = arith.constant 0.000000e+00 : f32
    %430 = vector.broadcast %cst_110 : f32 to vector<2x32xf32>
    %431 = arith.cmpf ogt, %429, %430 : vector<2x32xf32>
    %432 = arith.extui %431 : vector<2x32xi1> to vector<2x32xi32>
    %433 = arith.sitofp %432 : vector<2x32xi32> to vector<2x32xf32>
    %434 = arith.addf %405, %433 : vector<2x32xf32>
    %cst_111 = arith.constant 4.000000e-02 : f32
    %435 = vector.broadcast %cst_111 : f32 to vector<2x32xf32>
    %436 = arith.mulf %435, %425 : vector<2x32xf32>
    %437 = arith.mulf %436, %425 : vector<2x32xf32>
    %cst_112 = arith.constant 5.000000e+00 : f32
    %438 = vector.broadcast %cst_112 : f32 to vector<2x32xf32>
    %439 = arith.mulf %438, %425 : vector<2x32xf32>
    %440 = arith.addf %437, %439 : vector<2x32xf32>
    %cst_113 = arith.constant 1.400000e+02 : f32
    %441 = vector.broadcast %cst_113 : f32 to vector<2x32xf32>
    %442 = arith.addf %440, %441 : vector<2x32xf32>
    %443 = arith.subf %442, %427 : vector<2x32xf32>
    %444 = arith.addf %443, %15 : vector<2x32xf32>
    %cst_114 = arith.constant 1.000000e+00 : f32
    %445 = vector.broadcast %cst_114 : f32 to vector<2x32xf32>
    %446 = arith.mulf %445, %444 : vector<2x32xf32>
    %447 = arith.addf %425, %446 : vector<2x32xf32>
    %cst_115 = arith.constant 3.000000e+01 : f32
    %448 = vector.broadcast %cst_115 : f32 to vector<2x32xf32>
    %449 = arith.cmpf oge, %447, %448 : vector<2x32xf32>
    %450 = arith.select %449, %19, %447 : vector<2x32xi1>, vector<2x32xf32>
    %cst_116 = arith.constant 2.000000e+00 : f32
    %451 = vector.broadcast %cst_116 : f32 to vector<2x32xf32>
    %452 = arith.subf %450, %451 : vector<2x32xf32>
    %cst_117 = arith.constant 0.000000e+00 : f32
    %453 = vector.broadcast %cst_117 : f32 to vector<2x32xf32>
    %454 = arith.cmpf ogt, %452, %453 : vector<2x32xf32>
    %455 = arith.extui %454 : vector<2x32xi1> to vector<2x32xi32>
    %456 = arith.sitofp %455 : vector<2x32xi32> to vector<2x32xf32>
    %457 = arith.addf %434, %456 : vector<2x32xf32>
    %cst_118 = arith.constant 0.0666666701 : f32
    %458 = vector.broadcast %cst_118 : f32 to vector<2x32xf32>
    %459 = arith.mulf %457, %458 : vector<2x32xf32>
    %c0_119 = arith.constant 0 : index
    %c0_120 = arith.constant 0 : index
    %460 = vector.load %arg4[%c0_119, %c0_120] : memref<32x64xf32, #tpu.memory_space<vmem>>, vector<32x64xf32>
    %cst_121 = arith.constant dense<0.000000e+00> : vector<2x64xf32>
    %461 = tpu.matmul %459, %460, %cst_121 {dimension_numbers = #tpu.dot_dimension_numbers<[1], [0], [0], [1], [0, 0, 1, 1], [], []>} : vector<2x32xf32>, vector<32x64xf32>, vector<2x64xf32> -> vector<2x64xf32>
    %c0_122 = arith.constant 0 : index
    %c0_123 = arith.constant 0 : index
    %462 = vector.load %arg5[%c0_122, %c0_123] : memref<1x64xf32, #tpu.memory_space<vmem>>, vector<1x64xf32>
    %463 = vector.broadcast %462 : vector<1x64xf32> to vector<2x64xf32>
    %464 = arith.addf %461, %463 : vector<2x64xf32>
    %cst_124 = arith.constant 0.000000e+00 : f32
    %465 = vector.broadcast %cst_124 : f32 to vector<2x64xf32>
    %466 = arith.maximumf %464, %465 : vector<2x64xf32>
    %c0_125 = arith.constant 0 : index
    %c0_126 = arith.constant 0 : index
    %467 = vector.load %arg6[%c0_125, %c0_126] : memref<64x64xf32, #tpu.memory_space<vmem>>, vector<64x64xf32>
    %cst_127 = arith.constant dense<0.000000e+00> : vector<2x64xf32>
    %468 = tpu.matmul %466, %467, %cst_127 {dimension_numbers = #tpu.dot_dimension_numbers<[1], [0], [0], [1], [0, 0, 1, 1], [], []>} : vector<2x64xf32>, vector<64x64xf32>, vector<2x64xf32> -> vector<2x64xf32>
    %c0_128 = arith.constant 0 : index
    %c0_129 = arith.constant 0 : index
    %469 = vector.load %arg7[%c0_128, %c0_129] : memref<1x64xf32, #tpu.memory_space<vmem>>, vector<1x64xf32>
    %470 = vector.broadcast %469 : vector<1x64xf32> to vector<2x64xf32>
    %471 = arith.addf %468, %470 : vector<2x64xf32>
    %cst_130 = arith.constant 0.000000e+00 : f32
    %472 = vector.broadcast %cst_130 : f32 to vector<2x64xf32>
    %473 = arith.maximumf %471, %472 : vector<2x64xf32>
    %c0_131 = arith.constant 0 : index
    %c0_132 = arith.constant 0 : index
    %474 = vector.load %arg8[%c0_131, %c0_132] : memref<64x16xf32, #tpu.memory_space<vmem>>, vector<64x16xf32>
    %cst_133 = arith.constant dense<0.000000e+00> : vector<2x16xf32>
    %475 = tpu.matmul %473, %474, %cst_133 {dimension_numbers = #tpu.dot_dimension_numbers<[1], [0], [0], [1], [0, 0, 1, 1], [], []>} : vector<2x64xf32>, vector<64x16xf32>, vector<2x16xf32> -> vector<2x16xf32>
    %c0_134 = arith.constant 0 : index
    %c0_135 = arith.constant 0 : index
    %476 = vector.load %arg9[%c0_134, %c0_135] : memref<1x16xf32, #tpu.memory_space<vmem>>, vector<1x16xf32>
    %477 = vector.broadcast %476 : vector<1x16xf32> to vector<2x16xf32>
    %478 = arith.addf %475, %477 : vector<2x16xf32>
    %479 = tpu.iota {dimensions = array<i32: 1>} : vector<2x16xi32>
    %c8_i32 = arith.constant 8 : i32
    %480 = vector.broadcast %c8_i32 : i32 to vector<2x16xi32>
    %481 = arith.cmpi sge, %479, %480 : vector<2x16xi32>
    %cst_136 = arith.constant -2.000000e+01 : f32
    %cst_137 = arith.constant 2.000000e+00 : f32
    %482 = vector.broadcast %cst_136 : f32 to vector<2x16xf32>
    %483 = arith.maximumf %482, %478 : vector<2x16xf32>
    %484 = vector.broadcast %cst_137 : f32 to vector<2x16xf32>
    %485 = arith.minimumf %484, %483 : vector<2x16xf32>
    %486 = arith.select %481, %485, %478 : vector<2x16xi1>, vector<2x16xf32>
    %c0_138 = arith.constant 0 : index
    %c0_139 = arith.constant 0 : index
    %487 = vector.load %arg10[%c0_138, %c0_139] : memref<2x16xf32, #tpu.memory_space<vmem>>, vector<2x16xf32>
    tpu.vector_store %arg10[%c0_138, %c0_139], %486 {strides = array<i32>} : memref<2x16xf32, #tpu.memory_space<vmem>>, vector<2x16xf32>,
    return
  }
  func.func @transform_0(%arg0: i32) -> (i32, i32, i32) {
    %c0_i32 = arith.constant 0 : i32
    %c0_i32_0 = arith.constant 0 : i32
    %c0_i32_1 = arith.constant 0 : i32
    return %c0_i32, %arg0, %c0_i32_0 : i32, i32, i32
  }
  func.func @transform_1(%arg0: i32) -> (i32, i32) {
    %c0_i32 = arith.constant 0 : i32
    %c0_i32_0 = arith.constant 0 : i32
    %c0_i32_1 = arith.constant 0 : i32
    return %c0_i32, %c0_i32_0 : i32, i32
  }
  func.func @transform_2(%arg0: i32) -> (i32, i32) {
    %c0_i32 = arith.constant 0 : i32
    %c0_i32_0 = arith.constant 0 : i32
    %c0_i32_1 = arith.constant 0 : i32
    return %c0_i32, %c0_i32_0 : i32, i32
  }
  func.func @transform_3(%arg0: i32) -> (i32, i32) {
    %c0_i32 = arith.constant 0 : i32
    %c0_i32_0 = arith.constant 0 : i32
    %c0_i32_1 = arith.constant 0 : i32
    return %c0_i32, %c0_i32_0 : i32, i32
  }
  func.func @transform_4(%arg0: i32) -> (i32, i32) {
    %c0_i32 = arith.constant 0 : i32
    %c0_i32_0 = arith.constant 0 : i32
    %c0_i32_1 = arith.constant 0 : i32
    return %c0_i32, %c0_i32_0 : i32, i32
  }
  func.func @transform_5(%arg0: i32) -> (i32, i32) {
    %c0_i32 = arith.constant 0 : i32
    %c0_i32_0 = arith.constant 0 : i32
    %c0_i32_1 = arith.constant 0 : i32
    return %c0_i32, %c0_i32_0 : i32, i32
  }
  func.func @transform_6(%arg0: i32) -> (i32, i32) {
    %c0_i32 = arith.constant 0 : i32
    %c0_i32_0 = arith.constant 0 : i32
    %c0_i32_1 = arith.constant 0 : i32
    return %c0_i32, %c0_i32_0 : i32, i32
  }
  func.func @transform_7(%arg0: i32) -> (i32, i32) {
    %c0_i32 = arith.constant 0 : i32
    %c0_i32_0 = arith.constant 0 : i32
    %c0_i32_1 = arith.constant 0 : i32
    return %c0_i32, %c0_i32_0 : i32, i32
  }
  func.func @transform_8(%arg0: i32) -> (i32, i32) {
    %c0_i32 = arith.constant 0 : i32
    %c0_i32_0 = arith.constant 0 : i32
    %c0_i32_1 = arith.constant 0 : i32
    return %c0_i32, %c0_i32_0 : i32, i32
  }
  func.func @transform_9(%arg0: i32) -> (i32, i32) {
    %c0_i32 = arith.constant 0 : i32
    %c0_i32_0 = arith.constant 0 : i32
    return %arg0, %c0_i32 : i32, i32
  }
}

</mosaic_0001>

<bundles_post_ra>
// kernel: tpu_custom_call.1
= control target key start
LH: loop header
LB: loop body
LE: loop exit
PB: predicated region body
PF: predicated region fallthrough
CT: control target
= control target key end

     0   :  { %14 = vsyncpa [#allocation3], 0  ;;  %s1382_s0 = inlined_call_operand.hbm [shape: f32[5,2,24], index: 0, kind: input, shape index: {}]   ;;  %s1383_s1 = inlined_call_operand.hbm [shape: f32[24,32], index: 1, kind: input, shape index: {}]   ;;  %s1384_s2 = inlined_call_operand.hbm [shape: f32[5,32], index: 2, kind: input, shape index: {}]   ;;  %s1385_s3 = inlined_call_operand.vmem [shape: f32[32,64], index: 3, kind: input, shape index: {}]   ;;  %s1386_s4 = inlined_call_operand.vmem [shape: f32[1,64], index: 4, kind: input, shape index: {}]   ;;  %s1387_s5 = inlined_call_operand.vmem [shape: f32[64,64], index: 5, kind: input, shape index: {}]   ;;  %s1388_s6 = inlined_call_operand.vmem [shape: f32[1,64], index: 6, kind: input, shape index: {}]   ;;  %s1389_s7 = inlined_call_operand.vmem [shape: f32[64,16], index: 7, kind: input, shape index: {}]   ;;  %s1390_s8 = inlined_call_operand.vmem [shape: f32[1,16], index: 8, kind: input, shape index: {}]   ;;  %s1391_s9 = inlined_call_operand.hbm [shape: f32[2,16], index: 9, kind: output, shape index: {}]  }
   0x1   :  { %15 = vsyncpa [#allocation6], 0 }
   0x2   :  { %16 = vsyncpa [#allocation4], 0  ;;  %s1085_s30 = smov [#allocation5]   ;;  %s991_s13 = scalar_lea.hbm %s1383_s1, 384 }
   0x3   :  { %s34_s10 = sshll.u32 %s1085_s30, 4  ;;  %p992_p0 = scmp.ne.s32.totalorder %s1383_s1, %s991_s13  ;;  %s35_s10 = int_to_ptr.vmem [resolvable:$true] %s34_s10 }
   0x4   :  { %p995_p1 = scmp.lt.u32.totalorder %s991_s13, %s1383_s1 }
   0x6   :  { %p997_p2 = pnand %p995_p1, %p992_p0 }
   0x8   :  { %1000 = shalt.err (!%p997_p2)
}
   0x9   :  { %s1001_s18 = scalar_lea.vmem %s35_s10, 384  ;;  %p1006_p4 = scmp.lt.s32.totalorder %s35_s10, %s35_s10 }
   0xa   :  { %p1002_p3 = scmp.ne.s32.totalorder %s35_s10, %s1001_s18  ;;  %p1007_p5 = scmp.lt.s32.totalorder %s1001_s18, %s1001_s18 }
   0xc   :  { %p1008_p6 = por %p1007_p5, %p1006_p4 }
   0xe   :  { %p1009_p7 = pnand %p1008_p6, %p1002_p3 }
  0x10   :  { %1012 = shalt.err (!%p1009_p7)
}
  0x11   :  { %s1086_s19 = smov 128   ;;  %s1087_s20 = smov 8  }
  0x12   :  { %40 = dma.hbm_to_vmem [thread:$0]  %s1383_s1, 384, %s35_s10, [#allocation6], %s1086_s19, %s1086_s19, %s1087_s20  }
  0x13   :  { %s1088_s23 = smov [#allocation2]   ;;  %s1013_s27 = scalar_lea.hbm %s1382_s0, 160 }
  0x14   :  { %s22_s24 = sshll.u32 %s1088_s23, 4  ;;  %p1014_p8 = scmp.ne.s32.totalorder %s1382_s0, %s1013_s27  ;;  %s23_s24 = int_to_ptr.vmem [resolvable:$true] %s22_s24 }
  0x15   :  { %p1017_p9 = scmp.lt.u32.totalorder %s1013_s27, %s1382_s0 }
  0x17   :  { %p1019_p10 = pnand %p1017_p9, %p1014_p8 }
  0x19   :  { %1022 = shalt.err (!%p1019_p10)
}
  0x1a   :  { %s1023_s12 = scalar_lea.vmem %s23_s24, 160  ;;  %p1028_p12 = scmp.lt.s32.totalorder %s23_s24, %s23_s24 }
  0x1b   :  { %p1024_p11 = scmp.ne.s32.totalorder %s23_s24, %s1023_s12  ;;  %p1029_p13 = scmp.lt.s32.totalorder %s1023_s12, %s1023_s12 }
  0x1d   :  { %p1030_p0 = por %p1029_p13, %p1028_p12 }
  0x1f   :  { %p1031_p1 = pnand %p1030_p0, %p1024_p11 }
  0x21   :  { %1034 = shalt.err (!%p1031_p1)
}
  0x22   :  { %s1089_s1 = smov 32   ;;  %s1090_s10 = smov 2  }
  0x23   :  { %28 = dma.hbm_to_vmem [thread:$0]  %s1382_s0, 160, %s23_s24, [#allocation3], %s1089_s1, %s1089_s1, %s1090_s10  }
  0x24   :  { %s1091_s15 = smov [#allocation7]   ;;  %s1035_s19 = scalar_lea.hbm %s1384_s2, 128 }
  0x25   :  { %s47_s16 = sshll.u32 %s1091_s15, 4  ;;  %p1036_p2 = scmp.ne.s32.totalorder %s1384_s2, %s1035_s19  ;;  %s48_s16 = int_to_ptr.vmem [resolvable:$true] %s47_s16 }
  0x26   :  { %p1039_p3 = scmp.lt.u32.totalorder %s1035_s19, %s1384_s2 }
  0x28   :  { %p1041_p4 = pnand %p1039_p3, %p1036_p2 }
  0x2a   :  { %1044 = shalt.err (!%p1041_p4)
}
  0x2b   :  { %s1045_s25 = scalar_lea.vmem %s48_s16, 128  ;;  %p1050_p6 = scmp.lt.s32.totalorder %s48_s16, %s48_s16 }
  0x2c   :  { %p1046_p5 = scmp.ne.s32.totalorder %s48_s16, %s1045_s25  ;;  %p1051_p7 = scmp.lt.s32.totalorder %s1045_s25, %s1045_s25 }
  0x2e   :  { %p1052_p8 = por %p1051_p7, %p1050_p6 }
  0x30   :  { %p1053_p9 = pnand %p1052_p8, %p1046_p5 }
  0x32   :  { %1056 = shalt.err (!%p1053_p9)
}
  0x33   :  { %50 = dma.hbm_to_vmem [thread:$0]  %s1384_s2, 128, %s48_s16, [#allocation6]  }
  0x34   :  { %1079 = dma.done.wait [#allocation3], 160  }
  0x35   :  { %1080 = vsyncadd [#allocation3], 4294967136 }
  0x36   :  { %1081 = dma.done.wait [#allocation6], 512  }
  0x37   :  { %1082 = vsyncadd [#allocation6], 4294966784  ;;  %v99_v0 = vlaneseq  ;;  %v1092_v1 = vmov 1983009808   ;;  %v82_v5 = vld [vmem:[#allocation5] sm:$0xff]  ;;  %v83_v6 = vld [vmem:[#allocation5 + $0x8] sm:$0xff] }
  0x38   :  { %v97_v2 = vunpack.c.l.s4 %v1092_v1  ;;  %v945_v8 = vpack.c.bf16 %v83_v6, %v82_v5  ;;  %v77_v9 = vld [vmem:[#allocation2] sm:$0x3]  ;;  %v78_v10 = vld [vmem:[#allocation2 + $0x2] sm:$0x3]  ;;  %v79_v11 = vld [vmem:[#allocation2 + $0x4] sm:$0x3] }
  0x39   :  { %v100_v4 = vshrl.u32 %v99_v0, 7  ;;  %v84_v12 = vld [vmem:[#allocation5 + $0x10] sm:$0xff]  ;;  %v80_v13 = vld [vmem:[#allocation2 + $0x6] sm:$0x3]  ;;  %v94_v14 = vcombine.low %v77_v9, %v78_v10  ;;  %vm118_vm0 = vcmask 195584   ;;  %v1093_v57 = vmov 0.0  }
  0x3a   :  { %v98_v3 = vunpack.c.0.s8 %v97_v2  ;;  %946 = vmatprep.subr.bf16.mxu0 %v945_v8  ;;  %v95_v15 = vcombine.low %v79_v11, %v80_v13  ;;  %v816_v19 = vld.sshfl [vmem:[#allocation2 + $0x8] sm:$0x3 pattern:$0x76325410]  ;;  %v1184_v20 = vld [vmem:[#allocation7 + $0x2] ss:$0 sm:$0xff] }
  0x3b   :  { %948 = vmatpush3.bf16.msra.mxu0 %v945_v8  ;;  %v214_v21 = vmul.f32 -65.0, %v1184_v20  ;;  %v815_v22 = vld [vmem:[#allocation7] ss:$0 sm:$0xff]  ;;  %v1192_v29 = vld [vmem:[#allocation7 + $0x3] ss:$0 sm:$0xff]  ;;  %vm1095_vm10 = vmmov 0  }
  0x3c   :  { %v101_v7 = vsub.s32 %v98_v3, %v100_v4  ;;  %891 = vmatprep.subr.mxu0 %v84_v12  ;;  %v1195_v32 = vld [vmem:[#allocation7 + $0x1] ss:$0 sm:$0xff]  ;;  %v1199_v39 = vld [vmem:[#allocation7 + $0x4] ss:$0 sm:$0xff]  ;;  %904 = vmatprep.mubr.msk.f32.mxu1 %vm1095_vm10, %v1093_v57 }
  0x3d   :  { %v215_v24 = vsub.f32 -16.0, %v214_v21 }
  0x3e   :  { %v102_v16 = vrot.slane %v94_v14, %v101_v7  ;;  %v109_v17 = vrot.slane %v95_v15, %v101_v7 }
  0x3f   :  { %892 = vmatpush3.msra.mxu0 %v84_v12 }
  0x40   :  { %v110_v18 = vcombine.low %v102_v16, %v109_v17 }
  0x42   :  { %893 = vmatprep.mubr.msk.f32.mxu0 %vm118_vm0, %v110_v18 }
  0x43   :  { %894 = vmatmul.mubr.msk.f32.vlgmr.msra.gmra.mrb[0].mxu0 %vm118_vm0, %v816_v19 }
  0x44   :  { %923 = vmatprep.mubr.msk.f32.mxu0 %vm1095_vm10, %v1093_v57 }
 0x116   :  { %v895_v23 = vpop.f32.mrb[0].mxu0 }
 0x117   :  { %v1187_v25 = vadd.f32 %v895_v23, %v815_v22  ;;  %v189_v26 = vpop.f32.mrb[1].mxu0 }
 0x118   :  { %v1189_v27 = vadd.f32 %v815_v22, %v189_v26 }
 0x11a   :  { %v216_v28 = vadd.f32 %v215_v24, %v1189_v27  ;;  %v280_v23 = vrot.slane %v1189_v27, 2 }
 0x11c   :  { %v217_v30 = vadd.f32 -65.0, %v216_v28 }
 0x11e   :  { %v218_v31 = vmul.f32 %v1184_v20, %v217_v30  ;;  %vm222_vm1 = vcmp.ge.f32.partialorder %v217_v30, 30.0 }
 0x11f   :  { %v223_v33 = vsel %vm222_vm1, %v1192_v29, %v217_v30 }
 0x120   :  { %v219_v34 = vsub.f32 %v218_v31, %v214_v21  ;;  %v231_v35 = vmul.f32 0.04, %v223_v33  ;;  %v233_v38 = vmul.f32 5.0, %v223_v33  ;;  %v823_v47 = vadd.f32 -2.0, %v223_v33 }
 0x122   :  { %v220_v36 = vmul.f32 %v1195_v32, %v219_v34  ;;  %v232_v37 = vmul.f32 %v231_v35, %v223_v33  ;;  %vm227_vm3 = vcmp.gt.f32.partialorder %v823_v47, 0.0 }
 0x123   :  { %v824_v58 = vsel %vm227_vm3, 1.0, %v1093_v57 }
 0x124   :  { %v221_v40 = vadd.f32 %v220_v36, %v214_v21  ;;  %v234_v41 = vadd.f32 %v233_v38, %v232_v37 }
 0x126   :  { %v224_v42 = vadd.f32 %v1199_v39, %v221_v40  ;;  %v235_v43 = vadd.f32 140.0, %v234_v41 }
 0x128   :  { %v225_v44 = vsel %vm222_vm1, %v224_v42, %v221_v40 }
 0x129   :  { %v236_v45 = vsub.f32 %v235_v43, %v225_v44 }
 0x12b   :  { %v237_v46 = vadd.f32 %v236_v45, %v1189_v27 }
 0x12d   :  { %v238_v48 = vadd.f32 %v237_v46, %v223_v33 }
 0x12f   :  { %v239_v49 = vmul.f32 %v1184_v20, %v238_v48  ;;  %vm243_vm2 = vcmp.ge.f32.partialorder %v238_v48, 30.0 }
 0x130   :  { %v244_v50 = vsel %vm243_vm2, %v1192_v29, %v238_v48 }
 0x131   :  { %v240_v51 = vsub.f32 %v239_v49, %v225_v44  ;;  %v825_v52 = vadd.f32 -2.0, %v244_v50  ;;  %v252_v53 = vmul.f32 0.04, %v244_v50  ;;  %v254_v56 = vmul.f32 5.0, %v244_v50  ;;  %v527_v49 = vld [vmem:[%s1385_s3] sm:$0xff] }
 0x133   :  { %v241_v54 = vmul.f32 %v1195_v32, %v240_v51  ;;  %vm248_vm4 = vcmp.gt.f32.partialorder %v825_v52, 0.0  ;;  %v253_v55 = vmul.f32 %v252_v53, %v244_v50  ;;  %v529_v51 = vld [vmem:[%s1385_s3 + $0x10] sm:$0xff]  ;;  %v1094_v53 = vmov 0.0|0.0  }
 0x134   :  { %v826_v59 = vsel %vm248_vm4, 1.0, %v1093_v57  ;;  %949 = vmatprep.subr.bf16.mxu1 %v1094_v53  ;;  %955 = vmatprep.subr.bf16.mxu0 %v1094_v53 }
 0x135   :  { %v242_v60 = vadd.f32 %v241_v54, %v225_v44  ;;  %v251_v61 = vadd.f32 %v826_v59, %v824_v58  ;;  %v255_v62 = vadd.f32 %v254_v56, %v253_v55  ;;  %v530_v55 = vld [vmem:[%s1385_s3 + $0x18] sm:$0xff] }
 0x137   :  { %v245_v63 = vadd.f32 %v1199_v39, %v242_v60  ;;  %v256_v1 = vadd.f32 140.0, %v255_v62 }
 0x139   :  { %v246_v2 = vsel %vm243_vm2, %v245_v63, %v242_v60  ;;  %v953_v60 = vpack.c.bf16 %v530_v55, %v529_v51 }
 0x13a   :  { %v257_v3 = vsub.f32 %v256_v1, %v246_v2 }
 0x13c   :  { %v258_v4 = vadd.f32 %v257_v3, %v1189_v27 }
 0x13e   :  { %v259_v5 = vadd.f32 %v258_v4, %v244_v50  ;;  %v528_v50 = vld [vmem:[%s1385_s3 + $0x8] sm:$0xff] }
 0x13f   :  { %v950_v54 = vpack.c.bf16 %v528_v50, %v527_v49 }
 0x140   :  { %v260_v6 = vmul.f32 %v1184_v20, %v259_v5  ;;  %vm264_vm5 = vcmp.ge.f32.partialorder %v259_v5, 30.0 }
 0x141   :  { %v265_v7 = vsel %vm264_vm5, %v1192_v29, %v259_v5  ;;  %951 = vmatpush3.bf16.msra.mxu1 %v950_v54 }
 0x142   :  { %v261_v8 = vsub.f32 %v260_v6, %v246_v2  ;;  %v827_v9 = vadd.f32 -2.0, %v265_v7  ;;  %v273_v10 = vmul.f32 0.04, %v265_v7  ;;  %v275_v13 = vmul.f32 5.0, %v265_v7  ;;  %952 = vmatprep.subr.bf16.mxu1 %v1094_v53 }
 0x144   :  { %v262_v11 = vmul.f32 %v1195_v32, %v261_v8  ;;  %vm269_vm6 = vcmp.gt.f32.partialorder %v827_v9, 0.0  ;;  %v274_v12 = vmul.f32 %v273_v10, %v265_v7 }
 0x145   :  { %v828_v14 = vsel %vm269_vm6, 1.0, %v1093_v57  ;;  %954 = vmatpush3.bf16.msra.mxu1 %v953_v60  ;;  %v614_v60 = vld [vmem:[%s1387_s5 + $0x8] sm:$0xff] }
 0x146   :  { %v263_v15 = vadd.f32 %v262_v11, %v246_v2  ;;  %v276_v16 = vadd.f32 %v275_v13, %v274_v12  ;;  %v272_v17 = vadd.f32 %v828_v14, %v251_v61  ;;  %967 = vmatprep.subr.bf16.mxu1 %v1094_v53 }
 0x148   :  { %v266_v18 = vadd.f32 %v1199_v39, %v263_v15  ;;  %v277_v19 = vadd.f32 140.0, %v276_v16 }
 0x14a   :  { %v267_v21 = vsel %vm264_vm5, %v266_v18, %v263_v15 }
 0x14b   :  { %v278_v22 = vsub.f32 %v277_v19, %v267_v21 }
 0x14d   :  { %v282_v24 = vadd.f32 %v280_v23, %v278_v22 }
 0x14f   :  { %v283_v26 = vadd.f32 %v282_v24, %v265_v7 }
 0x151   :  { %v284_v28 = vmul.f32 %v1184_v20, %v283_v26  ;;  %vm288_vm7 = vcmp.ge.f32.partialorder %v283_v26, 30.0 }
 0x152   :  { %v289_v30 = vsel %vm288_vm7, %v1192_v29, %v283_v26 }
 0x153   :  { %v285_v31 = vsub.f32 %v284_v28, %v267_v21  ;;  %v297_v33 = vmul.f32 0.04, %v289_v30  ;;  %v829_v34 = vadd.f32 -2.0, %v289_v30  ;;  %v299_v37 = vmul.f32 5.0, %v289_v30 }
 0x155   :  { %v286_v35 = vmul.f32 %v1195_v32, %v285_v31  ;;  %v298_v36 = vmul.f32 %v297_v33, %v289_v30  ;;  %vm293_vm8 = vcmp.gt.f32.partialorder %v829_v34, 0.0  ;;  %v345_v33 = vrot.slane %v1189_v27, 4 }
 0x156   :  { %v830_v38 = vsel %vm293_vm8, 1.0, %v1093_v57 }
 0x157   :  { %v287_v40 = vadd.f32 %v286_v35, %v267_v21  ;;  %v300_v41 = vadd.f32 %v299_v37, %v298_v36  ;;  %v296_v42 = vadd.f32 %v830_v38, %v272_v17 }
 0x159   :  { %v290_v43 = vadd.f32 %v1199_v39, %v287_v40  ;;  %v301_v44 = vadd.f32 140.0, %v300_v41 }
 0x15b   :  { %v291_v45 = vsel %vm288_vm7, %v290_v43, %v287_v40 }
 0x15c   :  { %v302_v46 = vsub.f32 %v301_v44, %v291_v45 }
 0x15e   :  { %v303_v47 = vadd.f32 %v302_v46, %v280_v23 }
 0x160   :  { %v304_v48 = vadd.f32 %v303_v47, %v289_v30 }
 0x162   :  { %v305_v52 = vmul.f32 %v1184_v20, %v304_v48  ;;  %vm309_vm9 = vcmp.ge.f32.partialorder %v304_v48, 30.0 }
 0x163   :  { %v310_v56 = vsel %vm309_vm9, %v1192_v29, %v304_v48 }
 0x164   :  { %v306_v58 = vsub.f32 %v305_v52, %v291_v45  ;;  %v318_v59 = vmul.f32 0.04, %v310_v56  ;;  %v831_v61 = vadd.f32 -2.0, %v310_v56  ;;  %v320_v1 = vmul.f32 5.0, %v310_v56 }
 0x166   :  { %v307_v62 = vmul.f32 %v1195_v32, %v306_v58  ;;  %v319_v63 = vmul.f32 %v318_v59, %v310_v56  ;;  %vm314_vm11 = vcmp.gt.f32.partialorder %v831_v61, 0.0  ;;  %v613_v59 = vld [vmem:[%s1387_s5] sm:$0xff] }
 0x167   :  { %v832_v2 = vsel %vm314_vm11, 1.0, %v1093_v57 }
 0x168   :  { %v308_v3 = vadd.f32 %v307_v62, %v291_v45  ;;  %v321_v4 = vadd.f32 %v320_v1, %v319_v63  ;;  %v317_v5 = vadd.f32 %v832_v2, %v296_v42  ;;  %v615_v1 = vld [vmem:[%s1387_s5 + $0x10] sm:$0xff]  ;;  %v616_v2 = vld [vmem:[%s1387_s5 + $0x18] sm:$0xff] }
 0x16a   :  { %v311_v6 = vadd.f32 %v1199_v39, %v308_v3  ;;  %v322_v7 = vadd.f32 140.0, %v321_v4 }
 0x16c   :  { %v312_v8 = vsel %vm309_vm9, %v311_v6, %v308_v3  ;;  %v956_v3 = vpack.c.bf16 %v614_v60, %v613_v59 }
 0x16d   :  { %v323_v9 = vsub.f32 %v322_v7, %v312_v8 }
 0x16e   :  { %957 = vmatpush3.bf16.msra.mxu0 %v956_v3 }
 0x16f   :  { %v324_v10 = vadd.f32 %v323_v9, %v280_v23  ;;  %958 = vmatprep.subr.bf16.mxu0 %v1094_v53 }
 0x171   :  { %v325_v11 = vadd.f32 %v324_v10, %v310_v56 }
 0x173   :  { %v326_v12 = vmul.f32 %v1184_v20, %v325_v11  ;;  %vm330_vm12 = vcmp.ge.f32.partialorder %v325_v11, 30.0 }
 0x174   :  { %v331_v13 = vsel %vm330_vm12, %v1192_v29, %v325_v11 }
 0x175   :  { %v327_v14 = vsub.f32 %v326_v12, %v312_v8  ;;  %v339_v15 = vmul.f32 0.04, %v331_v13  ;;  %v833_v16 = vadd.f32 -2.0, %v331_v13  ;;  %v341_v19 = vmul.f32 5.0, %v331_v13  ;;  %v617_v12 = vld [vmem:[%s1387_s5 + $0x20] sm:$0xff] }
 0x177   :  { %v328_v17 = vmul.f32 %v1195_v32, %v327_v14  ;;  %v340_v18 = vmul.f32 %v339_v15, %v331_v13  ;;  %vm335_vm13 = vcmp.gt.f32.partialorder %v833_v16, 0.0 }
 0x178   :  { %v834_v21 = vsel %vm335_vm13, 1.0, %v1093_v57 }
 0x179   :  { %v329_v22 = vadd.f32 %v328_v17, %v312_v8  ;;  %v342_v24 = vadd.f32 %v341_v19, %v340_v18  ;;  %v338_v26 = vadd.f32 %v834_v21, %v317_v5  ;;  %v959_v8 = vpack.c.bf16 %v616_v2, %v615_v1 }
 0x17b   :  { %v332_v23 = vadd.f32 %v1199_v39, %v329_v22  ;;  %v343_v28 = vadd.f32 140.0, %v342_v24  ;;  %960 = vmatpush3.bf16.msra.mxu0 %v959_v8 }
 0x17c   :  { %961 = vmatprep.subr.bf16.mxu0 %v1094_v53 }
 0x17d   :  { %v333_v30 = vsel %vm330_vm12, %v332_v23, %v329_v22 }
 0x17e   :  { %v344_v31 = vsub.f32 %v343_v28, %v333_v30 }
 0x180   :  { %v347_v34 = vadd.f32 %v345_v33, %v344_v31 }
 0x182   :  { %v348_v35 = vadd.f32 %v347_v34, %v331_v13  ;;  %v618_v13 = vld [vmem:[%s1387_s5 + $0x28] sm:$0xff] }
 0x183   :  { %v962_v16 = vpack.c.bf16 %v618_v13, %v617_v12 }
 0x184   :  { %v349_v36 = vmul.f32 %v1184_v20, %v348_v35  ;;  %vm353_vm14 = vcmp.ge.f32.partialorder %v348_v35, 30.0 }
 0x185   :  { %v354_v37 = vsel %vm353_vm14, %v1192_v29, %v348_v35  ;;  %963 = vmatpush3.bf16.msra.mxu0 %v962_v16 }
 0x186   :  { %v350_v38 = vsub.f32 %v349_v36, %v333_v30  ;;  %v362_v40 = vmul.f32 0.04, %v354_v37  ;;  %v835_v41 = vadd.f32 -2.0, %v354_v37  ;;  %v364_v44 = vmul.f32 5.0, %v354_v37  ;;  %964 = vmatprep.subr.bf16.mxu0 %v1094_v53 }
 0x188   :  { %v351_v42 = vmul.f32 %v1195_v32, %v350_v38  ;;  %v363_v43 = vmul.f32 %v362_v40, %v354_v37  ;;  %vm358_vm15 = vcmp.gt.f32.partialorder %v835_v41, 0.0 }
 0x189   :  { %v836_v45 = vsel %vm358_vm15, 1.0, %v1093_v57 }
 0x18a   :  { %v352_v46 = vadd.f32 %v351_v42, %v333_v30  ;;  %v365_v47 = vadd.f32 %v364_v44, %v363_v43  ;;  %v361_v48 = vadd.f32 %v836_v45, %v338_v26  ;;  %v410_v43 = vrot.slane %v1189_v27, 6 }
 0x18c   :  { %v355_v49 = vadd.f32 %v1199_v39, %v352_v46  ;;  %v366_v50 = vadd.f32 140.0, %v365_v47 }
 0x18e   :  { %v356_v51 = vsel %vm353_vm14, %v355_v49, %v352_v46 }
 0x18f   :  { %v367_v52 = vsub.f32 %v366_v50, %v356_v51 }
 0x191   :  { %v368_v54 = vadd.f32 %v367_v52, %v345_v33 }
 0x193   :  { %v369_v55 = vadd.f32 %v368_v54, %v354_v37 }
 0x195   :  { %v370_v56 = vmul.f32 %v1184_v20, %v369_v55  ;;  %vm374_vm0 = vcmp.ge.f32.partialorder %v369_v55, 30.0 }
 0x196   :  { %v375_v58 = vsel %vm374_vm0, %v1192_v29, %v369_v55 }
 0x197   :  { %v371_v61 = vsub.f32 %v370_v56, %v356_v51  ;;  %v383_v62 = vmul.f32 0.04, %v375_v58  ;;  %v837_v63 = vadd.f32 -2.0, %v375_v58  ;;  %v385_v6 = vmul.f32 5.0, %v375_v58 }
 0x199   :  { %v372_v4 = vmul.f32 %v1195_v32, %v371_v61  ;;  %v384_v5 = vmul.f32 %v383_v62, %v375_v58  ;;  %vm379_vm1 = vcmp.gt.f32.partialorder %v837_v63, 0.0 }
 0x19a   :  { %v838_v7 = vsel %vm379_vm1, 1.0, %v1093_v57  ;;  %vm538_vm1 = vcmask 261120  }
 0x19b   :  { %v373_v9 = vadd.f32 %v372_v4, %v356_v51  ;;  %v386_v10 = vadd.f32 %v385_v6, %v384_v5  ;;  %v382_v11 = vadd.f32 %v838_v7, %v361_v48 }
 0x19d   :  { %v376_v14 = vadd.f32 %v1199_v39, %v373_v9  ;;  %v387_v15 = vadd.f32 140.0, %v386_v10 }
 0x19f   :  { %v377_v17 = vsel %vm374_vm0, %v376_v14, %v373_v9 }
 0x1a0   :  { %v388_v18 = vsub.f32 %v387_v15, %v377_v17 }
 0x1a2   :  { %v389_v19 = vadd.f32 %v388_v18, %v345_v33 }
 0x1a4   :  { %v390_v21 = vadd.f32 %v389_v19, %v375_v58 }
 0x1a6   :  { %v391_v22 = vmul.f32 %v1184_v20, %v390_v21  ;;  %vm395_vm2 = vcmp.ge.f32.partialorder %v390_v21, 30.0 }
 0x1a7   :  { %v396_v24 = vsel %vm395_vm2, %v1192_v29, %v390_v21 }
 0x1a8   :  { %v392_v26 = vsub.f32 %v391_v22, %v377_v17  ;;  %v404_v23 = vmul.f32 0.04, %v396_v24  ;;  %v839_v28 = vadd.f32 -2.0, %v396_v24  ;;  %v406_v34 = vmul.f32 5.0, %v396_v24 }
 0x1aa   :  { %v393_v30 = vmul.f32 %v1195_v32, %v392_v26  ;;  %v405_v31 = vmul.f32 %v404_v23, %v396_v24  ;;  %vm400_vm3 = vcmp.gt.f32.partialorder %v839_v28, 0.0 }
 0x1ab   :  { %v840_v35 = vsel %vm400_vm3, 1.0, %v1093_v57  ;;  %vm797_vm3 = vcmask 123904  }
 0x1ac   :  { %v394_v33 = vadd.f32 %v393_v30, %v377_v17  ;;  %v407_v36 = vadd.f32 %v406_v34, %v405_v31  ;;  %v403_v37 = vadd.f32 %v840_v35, %v382_v11 }
 0x1ae   :  { %v397_v38 = vadd.f32 %v1199_v39, %v394_v33  ;;  %v408_v40 = vadd.f32 140.0, %v407_v36 }
 0x1b0   :  { %v398_v41 = vsel %vm395_vm2, %v397_v38, %v394_v33 }
 0x1b1   :  { %v409_v42 = vsub.f32 %v408_v40, %v398_v41 }
 0x1b3   :  { %v412_v44 = vadd.f32 %v410_v43, %v409_v42 }
 0x1b5   :  { %v413_v45 = vadd.f32 %v412_v44, %v396_v24 }
 0x1b7   :  { %v414_v46 = vmul.f32 %v1184_v20, %v413_v45  ;;  %vm418_vm4 = vcmp.ge.f32.partialorder %v413_v45, 30.0 }
 0x1b8   :  { %v419_v47 = vsel %vm418_vm4, %v1192_v29, %v413_v45 }
 0x1b9   :  { %v415_v48 = vsub.f32 %v414_v46, %v398_v41  ;;  %v427_v49 = vmul.f32 0.04, %v419_v47  ;;  %v841_v50 = vadd.f32 -2.0, %v419_v47  ;;  %v429_v54 = vmul.f32 5.0, %v419_v47 }
 0x1bb   :  { %v416_v51 = vmul.f32 %v1195_v32, %v415_v48  ;;  %v428_v52 = vmul.f32 %v427_v49, %v419_v47  ;;  %vm423_vm5 = vcmp.gt.f32.partialorder %v841_v50, 0.0 }
 0x1bc   :  { %v842_v55 = vsel %vm423_vm5, 1.0, %v1093_v57 }
 0x1bd   :  { %v417_v56 = vadd.f32 %v416_v51, %v398_v41  ;;  %v430_v58 = vadd.f32 %v429_v54, %v428_v52  ;;  %v426_v27 = vadd.f32 %v842_v55, %v403_v37 }
 0x1bf   :  { %v420_v59 = vadd.f32 %v1199_v39, %v417_v56  ;;  %v431_v60 = vadd.f32 140.0, %v430_v58 }
 0x1c1   :  { %v421_v61 = vsel %vm418_vm4, %v420_v59, %v417_v56 }
 0x1c2   :  { %v432_v62 = vsub.f32 %v431_v60, %v421_v61 }
 0x1c4   :  { %v433_v63 = vadd.f32 %v432_v62, %v410_v43 }
 0x1c6   :  { %v434_v1 = vadd.f32 %v433_v63, %v419_v47 }
 0x1c8   :  { %v435_v2 = vmul.f32 %v1184_v20, %v434_v1  ;;  %vm439_vm6 = vcmp.ge.f32.partialorder %v434_v1, 30.0 }
 0x1c9   :  { %v440_v3 = vsel %vm439_vm6, %v1192_v29, %v434_v1 }
 0x1ca   :  { %v436_v4 = vsub.f32 %v435_v2, %v421_v61  ;;  %v448_v5 = vmul.f32 0.04, %v440_v3  ;;  %v843_v6 = vadd.f32 -2.0, %v440_v3  ;;  %v450_v9 = vmul.f32 5.0, %v440_v3 }
 0x1cc   :  { %v437_v7 = vmul.f32 %v1195_v32, %v436_v4  ;;  %v449_v8 = vmul.f32 %v448_v5, %v440_v3  ;;  %vm444_vm7 = vcmp.gt.f32.partialorder %v843_v6, 0.0 }
 0x1cd   :  { %v844_v10 = vsel %vm444_vm7, 1.0, %v1093_v57 }
 0x1ce   :  { %v438_v11 = vadd.f32 %v437_v7, %v421_v61  ;;  %v451_v12 = vadd.f32 %v450_v9, %v449_v8  ;;  %v447_v13 = vadd.f32 %v844_v10, %v426_v27 }
 0x1d0   :  { %v441_v14 = vadd.f32 %v1199_v39, %v438_v11  ;;  %v452_v15 = vadd.f32 140.0, %v451_v12 }
 0x1d2   :  { %v442_v16 = vsel %vm439_vm6, %v441_v14, %v438_v11 }
 0x1d3   :  { %v453_v17 = vsub.f32 %v452_v15, %v442_v16 }
 0x1d5   :  { %v454_v18 = vadd.f32 %v453_v17, %v410_v43 }
 0x1d7   :  { %v455_v19 = vadd.f32 %v454_v18, %v440_v3 }
 0x1d9   :  { %v456_v21 = vmul.f32 %v1184_v20, %v455_v19  ;;  %vm460_vm8 = vcmp.ge.f32.partialorder %v455_v19, 30.0 }
 0x1da   :  { %v461_v22 = vsel %vm460_vm8, %v1192_v29, %v455_v19 }
 0x1db   :  { %v457_v24 = vsub.f32 %v456_v21, %v442_v16  ;;  %v845_v26 = vadd.f32 -2.0, %v461_v22  ;;  %v469_v23 = vmul.f32 0.04, %v461_v22  ;;  %v471_v31 = vmul.f32 5.0, %v461_v22 }
 0x1dd   :  { %v458_v28 = vmul.f32 %v1195_v32, %v457_v24  ;;  %vm465_vm9 = vcmp.gt.f32.partialorder %v845_v26, 0.0  ;;  %v470_v30 = vmul.f32 %v469_v23, %v461_v22  ;;  %v704_v24 = vld [vmem:[%s1389_s7 + $0x8] sm:$0xff]  ;;  %v706_v23 = vld [vmem:[%s1389_s7 + $0x18] sm:$0xff] }
 0x1de   :  { %v846_v34 = vsel %vm465_vm9, 1.0, %v1093_v57 }
 0x1df   :  { %v459_v35 = vadd.f32 %v458_v28, %v442_v16  ;;  %v468_v33 = vadd.f32 %v846_v34, %v447_v13  ;;  %v472_v36 = vadd.f32 %v471_v31, %v470_v30  ;;  %v707_v30 = vld [vmem:[%s1389_s7 + $0x20] sm:$0xff]  ;;  %v708_v31 = vld [vmem:[%s1389_s7 + $0x28] sm:$0xff] }
 0x1e0   :  { %v974_v34 = vpack.c.bf16 %v708_v31, %v707_v30 }
 0x1e1   :  { %v462_v37 = vadd.f32 %v1199_v39, %v459_v35  ;;  %v473_v38 = vadd.f32 140.0, %v472_v36 }
 0x1e3   :  { %v463_v40 = vsel %vm460_vm8, %v462_v37, %v459_v35  ;;  %v853_v35 = vld [vmem:[%s1386_s4] ss:$0 sm:$0xff] }
 0x1e4   :  { %v474_v41 = vsub.f32 %v473_v38, %v463_v40 }
 0x1e6   :  { %v475_v42 = vadd.f32 %v474_v41, %v1187_v25  ;;  %v710_v41 = vld [vmem:[%s1389_s7 + $0x38] sm:$0xff] }
 0x1e8   :  { %v476_v43 = vadd.f32 %v475_v42, %v461_v22  ;;  %v703_v22 = vld [vmem:[%s1389_s7] sm:$0xff] }
 0x1e9   :  { %v968_v26 = vpack.c.bf16 %v704_v24, %v703_v22 }
 0x1ea   :  { %v477_v44 = vmul.f32 %v1184_v20, %v476_v43  ;;  %vm481_vm11 = vcmp.ge.f32.partialorder %v476_v43, 30.0 }
 0x1eb   :  { %v482_v45 = vsel %vm481_vm11, %v1192_v29, %v476_v43 }
 0x1ec   :  { %v478_v46 = vsub.f32 %v477_v44, %v463_v40  ;;  %v847_v47 = vadd.f32 -2.0, %v482_v45  ;;  %v490_v48 = vmul.f32 0.04, %v482_v45  ;;  %v492_v51 = vmul.f32 5.0, %v482_v45 }
 0x1ee   :  { %v479_v49 = vmul.f32 %v1195_v32, %v478_v46  ;;  %vm486_vm12 = vcmp.gt.f32.partialorder %v847_v47, 0.0  ;;  %v491_v50 = vmul.f32 %v490_v48, %v482_v45  ;;  %v857_v47 = vld [vmem:[%s1390_s8] ss:$0 sm:$0xff] }
 0x1ef   :  { %v848_v52 = vsel %vm486_vm12, 1.0, %v1093_v57 }
 0x1f0   :  { %v480_v54 = vadd.f32 %v479_v49, %v463_v40  ;;  %v489_v55 = vadd.f32 %v848_v52, %v468_v33  ;;  %v493_v56 = vadd.f32 %v492_v51, %v491_v50  ;;  %v709_v40 = vld [vmem:[%s1389_s7 + $0x30] sm:$0xff]  ;;  %v792_v49 = vand.u32 127, %v99_v0 }
 0x1f1   :  { %v977_v42 = vpack.c.bf16 %v710_v41, %v709_v40 }
 0x1f2   :  { %v483_v58 = vadd.f32 %v1199_v39, %v480_v54  ;;  %v494_v27 = vadd.f32 140.0, %v493_v56  ;;  %vm793_vm2 = vcmp.ge.s32.totalorder %v792_v49, 8 }
 0x1f4   :  { %v484_v59 = vsel %vm481_vm11, %v483_v58, %v480_v54 }
 0x1f5   :  { %v495_v60 = vsub.f32 %v494_v27, %v484_v59 }
 0x1f7   :  { %v496_v61 = vadd.f32 %v495_v60, %v1187_v25 }
 0x1f9   :  { %v497_v62 = vadd.f32 %v496_v61, %v482_v45 }
 0x1fb   :  { %v498_v63 = vmul.f32 %v1184_v20, %v497_v62  ;;  %vm502_vm13 = vcmp.ge.f32.partialorder %v497_v62, 30.0 }
 0x1fc   :  { %v503_v1 = vsel %vm502_vm13, %v1192_v29, %v497_v62 }
 0x1fd   :  { %v499_v2 = vsub.f32 %v498_v63, %v484_v59  ;;  %v849_v3 = vadd.f32 -2.0, %v503_v1  ;;  %v511_v4 = vmul.f32 0.04, %v503_v1  ;;  %v513_v7 = vmul.f32 5.0, %v503_v1 }
 0x1ff   :  { %v500_v5 = vmul.f32 %v1195_v32, %v499_v2  ;;  %vm507_vm14 = vcmp.gt.f32.partialorder %v849_v3, 0.0  ;;  %v512_v6 = vmul.f32 %v511_v4, %v503_v1 }
 0x200   :  { %v850_v8 = vsel %vm507_vm14, 1.0, %v1093_v57 }
 0x201   :  { %v501_v9 = vadd.f32 %v500_v5, %v484_v59  ;;  %v510_v10 = vadd.f32 %v850_v8, %v489_v55  ;;  %v514_v11 = vadd.f32 %v513_v7, %v512_v6 }
 0x203   :  { %v504_v12 = vadd.f32 %v1199_v39, %v501_v9  ;;  %v515_v13 = vadd.f32 140.0, %v514_v11  ;;  %v619_v39 = vld [vmem:[%s1387_s5 + $0x30] sm:$0xff] }
 0x205   :  { %v505_v20 = vsel %vm502_vm13, %v504_v12, %v501_v9 }
 0x206   :  { %v516_v14 = vsub.f32 %v515_v13, %v505_v20 }
 0x208   :  { %v517_v15 = vadd.f32 %v516_v14, %v1187_v25  ;;  %v620_v25 = vld [vmem:[%s1387_s5 + $0x38] sm:$0xff] }
 0x20a   :  { %v518_v16 = vadd.f32 %v517_v15, %v503_v1 }
 0x20c   :  { %vm519_vm15 = vcmp.ge.f32.partialorder %v518_v16, 30.0 }
 0x20d   :  { %v520_v17 = vsel %vm519_vm15, %v1192_v29, %v518_v16  ;;  %v965_v29 = vpack.c.bf16 %v620_v25, %v619_v39 }
 0x20e   :  { %v851_v32 = vadd.f32 -2.0, %v520_v17 }
 0x20f   :  { %966 = vmatpush3.bf16.msra.mxu0 %v965_v29 }
 0x210   :  { %vm522_vm0 = vcmp.gt.f32.partialorder %v851_v32, 0.0 }
 0x211   :  { %v852_v18 = vsel %vm522_vm0, 1.0, %v1093_v57 }
 0x212   :  { %v525_v19 = vadd.f32 %v852_v18, %v510_v10 }
 0x214   :  { %v526_v21 = vmul.f32 0.06666667, %v525_v19 }
 0x216   :  { %905 = vmatmul.mubr.msk.f32.vlgmr.msra.gmra.mrb[0].mxu1 %vm538_vm1, %v526_v21 }
 0x217   :  { %942 = vmatprep.mubr.msk.f32.mxu1 %vm1095_vm10, %v1093_v57  ;;  %v705_v57 = vld [vmem:[%s1389_s7 + $0x10] sm:$0xff]  ;;  %969 = vmatpush3.bf16.msra.mxu1 %v968_v26  ;;  %vm628_vm10 = vcmask 523264   ;;  %s1096_s7 = smov [#allocation8]  }
 0x218   :  { %v971_v28 = vpack.c.bf16 %v706_v23, %v705_v57  ;;  %970 = vmatprep.subr.bf16.mxu1 %v1094_v53  ;;  %s805_s21 = sshll.u32 %s1096_s7, 4  ;;  %s806_s21 = int_to_ptr.vmem [resolvable:$true] %s805_s21 }
 0x219   :  { %p1062_p11 = scmp.lt.s32.totalorder %s806_s21, %s806_s21 }
 0x21b   :  { %972 = vmatpush3.bf16.msra.mxu1 %v971_v28 }
 0x21c   :  { %973 = vmatprep.subr.bf16.mxu1 %v1094_v53 }
 0x21f   :  { %975 = vmatpush3.bf16.msra.mxu1 %v974_v34 }
 0x220   :  { %976 = vmatprep.subr.bf16.mxu1 %v1094_v53  ;;  %v855_v53 = vld [vmem:[%s1388_s6] ss:$0 sm:$0xff]  ;;  %s1057_s6 = scalar_lea.vmem %s806_s21, 32 }
 0x221   :  { %p1058_p10 = scmp.ne.s32.totalorder %s806_s21, %s1057_s6  ;;  %p1063_p12 = scmp.lt.s32.totalorder %s1057_s6, %s1057_s6 }
 0x223   :  { %978 = vmatpush3.bf16.msra.mxu1 %v977_v42  ;;  %p1064_p13 = por %p1063_p12, %p1062_p11 }
 0x225   :  { %p1065_p0 = pnand %p1064_p13, %p1058_p10 }
 0x2e9   :  { %v608_v33 = vpop.f32.mrb[0].mxu1 }
 0x2ea   :  { %v609_v36 = vadd.f32 %v853_v35, %v608_v33  ;;  %v906_v37 = vpop.f32.mrb[1].mxu1 }
 0x2ec   :  { %v612_v38 = vmax.f32 %v609_v36, 0.0 }
 0x2ee   :  { %924 = vmatmul.mubr.msk.f32.vlgmr.msra.gmra.mrb[2].mxu0 %vm628_vm10, %v612_v38 }
 0x3c1   :  { %v698_v43 = vpop.f32.mrb[2].mxu0 }
 0x3c2   :  { %v699_v44 = vadd.f32 %v855_v53, %v698_v43  ;;  %v925_v45 = vpop.f32.mrb[3].mxu0 }
 0x3c4   :  { %v702_v46 = vmax.f32 %v699_v44, 0.0 }
 0x3c6   :  { %943 = vmatmul.mubr.msk.f32.vlgmr.msra.gmra.mrb[2].mxu1 %vm628_vm10, %v702_v46 }
 0x499   :  { %v787_v48 = vpop.f32.mrb[2].mxu1 }
 0x49a   :  { %v788_v50 = vadd.f32 %v857_v47, %v787_v48  ;;  %v944_v51 = vpop.f32.mrb[3].mxu1 }
 0x49c   :  { %v794_v52 = vmax.f32 %v788_v50, -20.0 }
 0x49e   :  { %v795_v54 = vmin.f32 %v794_v52, 2.0 }
 0x4a0   :  { %v796_v55 = vsel %vm793_vm2, %v795_v54, %v788_v50 }
 0x4a1   :  { %798 = vst.msk [vmem:[#allocation8] sm:$0x3] %vm797_vm3, %v796_v55 }
 0x4a2   :  { %1068 = shalt.err (!%p1065_p0)
}
 0x4a3   :  { %s1069_s23 = scalar_lea.hbm %s1391_s9, 32 }
 0x4a4   :  { %p1070_p1 = scmp.ne.s32.totalorder %s1391_s9, %s1069_s23  ;;  %p1073_p2 = scmp.lt.u32.totalorder %s1069_s23, %s1391_s9 }
 0x4a6   :  { %p1075_p3 = pnand %p1073_p2, %p1070_p1 }
 0x4a8   :  { %1078 = shalt.err (!%p1075_p3)
}
 0x4a9   :  { %808 = dma.vmem_to_hbm [thread:$0]  %s806_s21, 32, %s1391_s9, [#allocation4]  }
 0x4aa   :  { %1083 = dma.done.wait [#allocation4], 32  }
 0x4ab   :  { %1084 = vsyncadd [#allocation4], 4294967264 }
 0x4ac   :  { %812 = vsyncpa [#allocation3], 1 }
 0x4ad   :  { %813 = vsyncpa [#allocation6], 1 }
 0x4ae   :  { %814 = vsyncpa [#allocation4], 1 }

</bundles_post_ra>
